<compile_context>
chip_gen: v7x
topology: tpu7x:2x2x1
jax: 0.10.0
libtpu: 0.0.40
codegen_flags: <defaults>
</compile_context>

<pallas_src>
import functools

import jax
import jax.numpy as jnp
from jax.experimental import pallas as pl
from jax.experimental.pallas import tpu as pltpu

MXU_DTYPE = jnp.bfloat16          # memory-path / MXU operand dtype
VMEM_LIMIT = 48 * 1024 * 1024     # > default scoped limit on v5e/v6e, < v7x 64 MiB


# ------------------------------- Pallas kernel -------------------------------


def _fused_gating_kernel(x_ref, wg_ref, bg_ref, wc_ref, bc_ref, o_ref,
                         xs_ref, fg_ref, ow_ref, *, H, W):
    """out = relu(conv3x3(x * sigmoid(conv3x3(x)+bg)) + bc), one image per step.

    x_ref : (1, Cin, Lp)   zero-padded bf16 image, Lp = (H+3)*(W+2)
    wg_ref: (Cin, 9*Cin)   packed gating-conv weight (tap-major K), bf16
    bg_ref: (Cin, 1)       gating-conv bias, f32
    wc_ref: (Cout, 9*Cin)  packed second-conv weight, bf16
    bc_ref: (Cout, 1)      second-conv bias, f32
    o_ref : (1, Cout, H*W) cropped row-major output, f32
    xs_ref: (9*Cin, Lw)    tap-slab scratch (reused by both convs), bf16
    fg_ref: (Cin, Lp)      padded gated feature scratch, bf16
    ow_ref: (Cout, Lw)     wide second-conv output scratch, f32
    """
    Wp = W + 2
    Lw = H * Wp
    Lp = x_ref.shape[2]
    cin = x_ref.shape[1]

    # ---- gating conv: 9 tap slabs via static lane-offset slices, then a
    #      single K = 9*Cin MXU contraction with an f32 epilogue.
    for t in range(9):
        dy, dx = divmod(t, 3)
        off = dy * Wp + dx
        xs_ref[t * cin:(t + 1) * cin, :] = x_ref[0, :, pl.ds(off, Lw)]

    g = jax.nn.sigmoid(
        jnp.dot(wg_ref[...], xs_ref[...], preferred_element_type=jnp.float32)
        + bg_ref[...])                                          # (Cin, Lw) f32

    # Center tap (dy=1, dx=1) is the unpadded pixel itself; at wrap columns
    # (j mod Wp >= W) it is an exact zero-pad element, so fg is exactly zero
    # there and the padded re-emit below is a valid zero-padded image.
    center = xs_ref[4 * cin:5 * cin, :].astype(jnp.float32)
    fg = (center * g).astype(fg_ref.dtype)                      # (Cin, Lw) bf16

    # ---- re-emit fg in padded layout inside VMEM: border-only zero fill
    #      (head [0, Wp+1), tail [Wp+1+Lw, Lp)), interior written densely.
    fg_ref[:, pl.ds(0, Wp + 1)] = jnp.zeros((cin, Wp + 1), fg_ref.dtype)
    fg_ref[:, pl.ds(Wp + 1 + Lw, Lp - (Wp + 1 + Lw))] = (
        jnp.zeros((cin, Lp - (Wp + 1 + Lw)), fg_ref.dtype))
    fg_ref[:, pl.ds(Wp + 1, Lw)] = fg

    # ---- second conv on the gated feature (tap slabs reuse xs_ref).
    for t in range(9):
        dy, dx = divmod(t, 3)
        off = dy * Wp + dx
        xs_ref[t * cin:(t + 1) * cin, :] = fg_ref[:, pl.ds(off, Lw)]

    ow_ref[...] = jnp.maximum(
        jnp.dot(wc_ref[...], xs_ref[...], preferred_element_type=jnp.float32)
        + bc_ref[...], 0.0)

    # ---- in-kernel crop of the two wrap columns per row: wide row h lives at
    #      lanes [h*Wp, h*Wp+W).  Emitting a dense (Cout, H*W) block means the
    #      wrapper's reshape to NCHW is free (no extra HBM pass).
    for h in range(H):
        o_ref[0, :, pl.ds(h * W, W)] = ow_ref[:, pl.ds(h * Wp, W)]


# ----------------------------- pallas_call wrapper ----------------------------


def pixel_gating_level(feat_cat, wg_p, bg_p, wc_p, bc_p):
    """(B, Cin, H, W) f32 concatenated features -> (B, Cout, H, W) f32."""
    B, cin, H, W = feat_cat.shape
    cout = wc_p.shape[0]
    Wp = W + 2
    Lp = (H + 3) * Wp
    Lw = H * Wp

    # Pad spatially once (top 1 / bottom 2 / left 1 / right 1), flatten the
    # padded image onto the lane axis, cast to bf16 (halves the input DMA).
    x_pad = jnp.pad(feat_cat, ((0, 0), (0, 0), (1, 2), (1, 1)))
    x_pad = x_pad.reshape(B, cin, Lp).astype(MXU_DTYPE)
    # The kernel's zero-wrap / lane-offset invariants assume exactly this pad.
    assert x_pad.shape == (B, cin, (H + 3) * (W + 2))

    out_flat = pl.pallas_call(
        functools.partial(_fused_gating_kernel, H=H, W=W),
        out_shape=jax.ShapeDtypeStruct((B, cout, H * W), jnp.float32),
        grid=(B,),
        in_specs=[
            pl.BlockSpec((1, cin, Lp), lambda b: (b, 0, 0)),     # per-image input
            pl.BlockSpec((cin, 9 * cin), lambda b: (0, 0)),      # Wg (resident)
            pl.BlockSpec((cin, 1), lambda b: (0, 0)),            # bg (resident)
            pl.BlockSpec((cout, 9 * cin), lambda b: (0, 0)),     # Wc (resident)
            pl.BlockSpec((cout, 1), lambda b: (0, 0)),           # bc (resident)
        ],
        out_specs=pl.BlockSpec((1, cout, H * W), lambda b: (b, 0, 0)),
        scratch_shapes=[
            pltpu.VMEM((9 * cin, Lw), MXU_DTYPE),    # tap slabs (both convs)
            pltpu.VMEM((cin, Lp), MXU_DTYPE),        # padded gated feature
            pltpu.VMEM((cout, Lw), jnp.float32),     # wide conv2 output
        ],
        compiler_params=pltpu.CompilerParams(
            dimension_semantics=("parallel",),       # batch across TCs on v7x
            vmem_limit_bytes=VMEM_LIMIT),
    )(x_pad, wg_p, bg_p, wc_p, bc_p)

    # Trailing-axis split of a contiguous array: free (bitcast) reshape.
    return out_flat.reshape(B, cout, H, W)


# -------------------------------- forward pass --------------------------------


def pixel_gating_forward(x, params, in_channels, gating_seq_len=4):
    """x: list (len gating_seq_len) of lists (len(in_channels)) of NCHW arrays."""
    outs = []
    for k, _ in enumerate(in_channels):
        feat_cat = jnp.concatenate([x[s][k] for s in range(gating_seq_len)],
                                   axis=1)                      # (B, C*S, H, W)
        outs.append(pixel_gating_level(
            feat_cat, params['wg_p'][k], params['bg_p'][k],
            params['wc_p'][k], params['bc_p'][k]))
    return outs


# --------------------------- parameter init + reference ------------------------


def init_params(key, in_channels, gating_seq_len):
    params = {'wg': [], 'bg': [], 'wc': [], 'bc': [],
              'wg_p': [], 'bg_p': [], 'wc_p': [], 'bc_p': []}
    for c in in_channels:
        cin = c * gating_seq_len
        key, k1, k2, k3, k4 = jax.random.split(key, 5)
        lim_g = (6.0 / (9 * cin + 9 * cin)) ** 0.5
        wg = jax.random.uniform(k1, (cin, cin, 3, 3), jnp.float32, -lim_g, lim_g)
        bg = 0.01 * jax.random.normal(k2, (cin,), jnp.float32)
        lim_c = (6.0 / (9 * cin + 9 * c)) ** 0.5
        wc = jax.random.uniform(k3, (c, cin, 3, 3), jnp.float32, -lim_c, lim_c)
        bc = 0.01 * jax.random.normal(k4, (c,), jnp.float32)

        params['wg'].append(wg)
        params['bg'].append(bg)
        params['wc'].append(wc)
        params['bc'].append(bc)
        # Packed, MXU-friendly copies: (Cout, 9*Cin) with K index = t*Cin + cin,
        # tap t = 3*dy + dx; weights cast to bf16 once here.
        params['wg_p'].append(
            jnp.transpose(wg, (0, 2, 3, 1)).reshape(cin, 9 * cin).astype(MXU_DTYPE))
        params['bg_p'].append(bg.reshape(cin, 1))
        params['wc_p'].append(
            jnp.transpose(wc, (0, 2, 3, 1)).reshape(c, 9 * cin).astype(MXU_DTYPE))
        params['bc_p'].append(bc.reshape(c, 1))
    return params


def _conv_nchw_ref(x, w, b):
    y = jax.lax.conv_general_dilated(
        x, w, (1, 1), 'SAME', dimension_numbers=('NCHW', 'OIHW', 'NCHW'))
    return y + b.reshape(1, -1, 1, 1)


def reference_forward(x, params, in_channels, gating_seq_len=4):
    outs = []
    for k, _ in enumerate(in_channels):
        feat_cat = jnp.concatenate([x[s][k] for s in range(gating_seq_len)], axis=1)
        g = jax.nn.sigmoid(_conv_nchw_ref(feat_cat, params['wg'][k], params['bg'][k]))
        fg = feat_cat * g
        out = jnp.maximum(_conv_nchw_ref(fg, params['wc'][k], params['bc'][k]), 0.0)
        outs.append(out)
    return outs


# ------------------------------------- main ------------------------------------


if __name__ == "__main__":
    in_channels = (8, 16, 8, 4)     # small synthetic per-level channel counts
    spatial = (16, 16, 8, 8)        # per-level H = W
    gating_seq_len = 4
    batch = 2

    key = jax.random.PRNGKey(0)
    key, pkey = jax.random.split(key)
    params = init_params(pkey, in_channels, gating_seq_len)

    x = []
    for seq in range(gating_seq_len):
        feats = []
        for c, s in zip(in_channels, spatial):
            key, sk = jax.random.split(key)
            feats.append(jax.random.normal(sk, (batch, c, s, s), jnp.float32))
        x.append(feats)

    outs = pixel_gating_forward(x, params, in_channels, gating_seq_len)
    outs = jax.block_until_ready(outs)

    refs = reference_forward(x, params, in_channels, gating_seq_len)
    for o, r in zip(outs, refs):
        assert o.shape == r.shape, (o.shape, r.shape)
        err = float(jnp.max(jnp.abs(o - r)))
        assert jnp.allclose(o, r, atol=2e-2, rtol=2e-2), err

    print("KERNEL_OK")
</pallas_src>

<mosaic_0001>
module attributes {stable_mosaic.version = 11 : i64} {
  func.func @_fused_gating_kernel(%arg0: i32, %arg1: memref<1x32x342xbf16, #tpu.memory_space<vmem>>, %arg2: memref<32x288xbf16, #tpu.memory_space<vmem>>, %arg3: memref<32x1xf32, #tpu.memory_space<vmem>>, %arg4: memref<8x288xbf16, #tpu.memory_space<vmem>>, %arg5: memref<8x1xf32, #tpu.memory_space<vmem>>, %arg6: memref<1x8x256xf32, #tpu.memory_space<vmem>>, %arg7: memref<288x288xbf16, #tpu.memory_space<vmem>>, %arg8: memref<32x342xbf16, #tpu.memory_space<vmem>>, %arg9: memref<8x288xf32, #tpu.memory_space<vmem>>) attributes {dimension_semantics = [#tpu.dimension_semantics<parallel>], iteration_bounds = array<i64: 2>, scalar_prefetch = 0 : i64, scratch_operands = 3 : i64, tpu.core_type = #tpu.core_type<tc>, window_params = [{transform_indices = @transform_0, window_bounds = array<i64: 1, 32, 342>}, {pipeline_mode = #tpu.pipeline_mode<synchronous>, transform_indices = @transform_1, window_bounds = array<i64: 32, 288>}, {pipeline_mode = #tpu.pipeline_mode<synchronous>, transform_indices = @transform_2, window_bounds = array<i64: 32, 1>}, {pipeline_mode = #tpu.pipeline_mode<synchronous>, transform_indices = @transform_3, window_bounds = array<i64: 8, 288>}, {pipeline_mode = #tpu.pipeline_mode<synchronous>, transform_indices = @transform_4, window_bounds = array<i64: 8, 1>}, {transform_indices = @transform_5, window_bounds = array<i64: 1, 8, 256>}]} {
    %c0 = arith.constant 0 : index
    %c0_0 = arith.constant 0 : index
    %c0_1 = arith.constant 0 : index
    %0 = vector.load %arg1[%c0, %c0_0, %c0_1] : memref<1x32x342xbf16, #tpu.memory_space<vmem>>, vector<1x32x288xbf16>
    %1 = vector.shape_cast %0 : vector<1x32x288xbf16> to vector<32x288xbf16>
    %c0_2 = arith.constant 0 : index
    %c0_3 = arith.constant 0 : index
    %2 = vector.load %arg7[%c0_2, %c0_3] : memref<288x288xbf16, #tpu.memory_space<vmem>>, vector<32x288xbf16>
    tpu.vector_store %arg7[%c0_2, %c0_3], %1 {strides = array<i32>} : memref<288x288xbf16, #tpu.memory_space<vmem>>, vector<32x288xbf16>,
    %c0_4 = arith.constant 0 : index
    %c0_5 = arith.constant 0 : index
    %c1 = arith.constant 1 : index
    %3 = vector.load %arg1[%c0_4, %c0_5, %c1] : memref<1x32x342xbf16, #tpu.memory_space<vmem>>, vector<1x32x288xbf16>
    %4 = vector.shape_cast %3 : vector<1x32x288xbf16> to vector<32x288xbf16>
    %c32 = arith.constant 32 : index
    %c0_6 = arith.constant 0 : index
    %5 = vector.load %arg7[%c32, %c0_6] : memref<288x288xbf16, #tpu.memory_space<vmem>>, vector<32x288xbf16>
    tpu.vector_store %arg7[%c32, %c0_6], %4 {strides = array<i32>} : memref<288x288xbf16, #tpu.memory_space<vmem>>, vector<32x288xbf16>,
    %c0_7 = arith.constant 0 : index
    %c0_8 = arith.constant 0 : index
    %c2 = arith.constant 2 : index
    %6 = vector.load %arg1[%c0_7, %c0_8, %c2] : memref<1x32x342xbf16, #tpu.memory_space<vmem>>, vector<1x32x288xbf16>
    %7 = vector.shape_cast %6 : vector<1x32x288xbf16> to vector<32x288xbf16>
    %c64 = arith.constant 64 : index
    %c0_9 = arith.constant 0 : index
    %8 = vector.load %arg7[%c64, %c0_9] : memref<288x288xbf16, #tpu.memory_space<vmem>>, vector<32x288xbf16>
    tpu.vector_store %arg7[%c64, %c0_9], %7 {strides = array<i32>} : memref<288x288xbf16, #tpu.memory_space<vmem>>, vector<32x288xbf16>,
    %c0_10 = arith.constant 0 : index
    %c0_11 = arith.constant 0 : index
    %c18 = arith.constant 18 : index
    %9 = vector.load %arg1[%c0_10, %c0_11, %c18] : memref<1x32x342xbf16, #tpu.memory_space<vmem>>, vector<1x32x288xbf16>
    %10 = vector.shape_cast %9 : vector<1x32x288xbf16> to vector<32x288xbf16>
    %c96 = arith.constant 96 : index
    %c0_12 = arith.constant 0 : index
    %11 = vector.load %arg7[%c96, %c0_12] : memref<288x288xbf16, #tpu.memory_space<vmem>>, vector<32x288xbf16>
    tpu.vector_store %arg7[%c96, %c0_12], %10 {strides = array<i32>} : memref<288x288xbf16, #tpu.memory_space<vmem>>, vector<32x288xbf16>,
    %c0_13 = arith.constant 0 : index
    %c0_14 = arith.constant 0 : index
    %c19 = arith.constant 19 : index
    %12 = vector.load %arg1[%c0_13, %c0_14, %c19] : memref<1x32x342xbf16, #tpu.memory_space<vmem>>, vector<1x32x288xbf16>
    %13 = vector.shape_cast %12 : vector<1x32x288xbf16> to vector<32x288xbf16>
    %c128 = arith.constant 128 : index
    %c0_15 = arith.constant 0 : index
    %14 = vector.load %arg7[%c128, %c0_15] : memref<288x288xbf16, #tpu.memory_space<vmem>>, vector<32x288xbf16>
    tpu.vector_store %arg7[%c128, %c0_15], %13 {strides = array<i32>} : memref<288x288xbf16, #tpu.memory_space<vmem>>, vector<32x288xbf16>,
    %c0_16 = arith.constant 0 : index
    %c0_17 = arith.constant 0 : index
    %c20 = arith.constant 20 : index
    %15 = vector.load %arg1[%c0_16, %c0_17, %c20] : memref<1x32x342xbf16, #tpu.memory_space<vmem>>, vector<1x32x288xbf16>
    %16 = vector.shape_cast %15 : vector<1x32x288xbf16> to vector<32x288xbf16>
    %c160 = arith.constant 160 : index
    %c0_18 = arith.constant 0 : index
    %17 = vector.load %arg7[%c160, %c0_18] : memref<288x288xbf16, #tpu.memory_space<vmem>>, vector<32x288xbf16>
    tpu.vector_store %arg7[%c160, %c0_18], %16 {strides = array<i32>} : memref<288x288xbf16, #tpu.memory_space<vmem>>, vector<32x288xbf16>,
    %c0_19 = arith.constant 0 : index
    %c0_20 = arith.constant 0 : index
    %c36 = arith.constant 36 : index
    %18 = vector.load %arg1[%c0_19, %c0_20, %c36] : memref<1x32x342xbf16, #tpu.memory_space<vmem>>, vector<1x32x288xbf16>
    %19 = vector.shape_cast %18 : vector<1x32x288xbf16> to vector<32x288xbf16>
    %c192 = arith.constant 192 : index
    %c0_21 = arith.constant 0 : index
    %20 = vector.load %arg7[%c192, %c0_21] : memref<288x288xbf16, #tpu.memory_space<vmem>>, vector<32x288xbf16>
    tpu.vector_store %arg7[%c192, %c0_21], %19 {strides = array<i32>} : memref<288x288xbf16, #tpu.memory_space<vmem>>, vector<32x288xbf16>,
    %c0_22 = arith.constant 0 : index
    %c0_23 = arith.constant 0 : index
    %c37 = arith.constant 37 : index
    %21 = vector.load %arg1[%c0_22, %c0_23, %c37] : memref<1x32x342xbf16, #tpu.memory_space<vmem>>, vector<1x32x288xbf16>
    %22 = vector.shape_cast %21 : vector<1x32x288xbf16> to vector<32x288xbf16>
    %c224 = arith.constant 224 : index
    %c0_24 = arith.constant 0 : index
    %23 = vector.load %arg7[%c224, %c0_24] : memref<288x288xbf16, #tpu.memory_space<vmem>>, vector<32x288xbf16>
    tpu.vector_store %arg7[%c224, %c0_24], %22 {strides = array<i32>} : memref<288x288xbf16, #tpu.memory_space<vmem>>, vector<32x288xbf16>,
    %c0_25 = arith.constant 0 : index
    %c0_26 = arith.constant 0 : index
    %c38 = arith.constant 38 : index
    %24 = vector.load %arg1[%c0_25, %c0_26, %c38] : memref<1x32x342xbf16, #tpu.memory_space<vmem>>, vector<1x32x288xbf16>
    %25 = vector.shape_cast %24 : vector<1x32x288xbf16> to vector<32x288xbf16>
    %c256 = arith.constant 256 : index
    %c0_27 = arith.constant 0 : index
    %26 = vector.load %arg7[%c256, %c0_27] : memref<288x288xbf16, #tpu.memory_space<vmem>>, vector<32x288xbf16>
    tpu.vector_store %arg7[%c256, %c0_27], %25 {strides = array<i32>} : memref<288x288xbf16, #tpu.memory_space<vmem>>, vector<32x288xbf16>,
    %c0_28 = arith.constant 0 : index
    %c0_29 = arith.constant 0 : index
    %27 = vector.load %arg2[%c0_28, %c0_29] : memref<32x288xbf16, #tpu.memory_space<vmem>>, vector<32x288xbf16>
    %c0_30 = arith.constant 0 : index
    %c0_31 = arith.constant 0 : index
    %28 = vector.load %arg7[%c0_30, %c0_31] : memref<288x288xbf16, #tpu.memory_space<vmem>>, vector<288x288xbf16>
    %cst = arith.constant dense<0.000000e+00> : vector<32x288xf32>
    %29 = tpu.matmul %27, %28, %cst {dimension_numbers = #tpu.dot_dimension_numbers<[1], [0], [0], [1], [0, 0, 1, 1], [], []>} : vector<32x288xbf16>, vector<288x288xbf16>, vector<32x288xf32> -> vector<32x288xf32>
    %c0_32 = arith.constant 0 : index
    %c0_33 = arith.constant 0 : index
    %30 = vector.load %arg3[%c0_32, %c0_33] : memref<32x1xf32, #tpu.memory_space<vmem>>, vector<32x1xf32>
    %31 = vector.broadcast %30 : vector<32x1xf32> to vector<32x288xf32>
    %32 = arith.addf %29, %31 : vector<32x288xf32>
    %33 = arith.negf %32 : vector<32x288xf32>
    %34 = math.exp %33 : vector<32x288xf32>
    %cst_34 = arith.constant 1.000000e+00 : f32
    %35 = vector.broadcast %cst_34 : f32 to vector<32x288xf32>
    %36 = arith.addf %35, %34 : vector<32x288xf32>
    %37 = arith.divf %35, %36 : vector<32x288xf32>
    %c128_35 = arith.constant 128 : index
    %c0_36 = arith.constant 0 : index
    %38 = vector.load %arg7[%c128_35, %c0_36] : memref<288x288xbf16, #tpu.memory_space<vmem>>, vector<32x288xbf16>
    %39 = arith.extf %38 : vector<32x288xbf16> to vector<32x288xf32>
    %40 = arith.mulf %39, %37 : vector<32x288xf32>
    %41 = arith.truncf %40 : vector<32x288xf32> to vector<32x288xbf16>
    %cst_37 = arith.constant 0.000000e+00 : bf16
    %42 = vector.broadcast %cst_37 : bf16 to vector<32x19xbf16>
    %c0_38 = arith.constant 0 : index
    %c0_39 = arith.constant 0 : index
    %43 = vector.load %arg8[%c0_38, %c0_39] : memref<32x342xbf16, #tpu.memory_space<vmem>>, vector<32x19xbf16>
    tpu.vector_store %arg8[%c0_38, %c0_39], %42 {strides = array<i32>} : memref<32x342xbf16, #tpu.memory_space<vmem>>, vector<32x19xbf16>,
    %cst_40 = arith.constant 0.000000e+00 : bf16
    %44 = vector.broadcast %cst_40 : bf16 to vector<32x35xbf16>
    %c0_41 = arith.constant 0 : index
    %c307 = arith.constant 307 : index
    %45 = vector.load %arg8[%c0_41, %c307] : memref<32x342xbf16, #tpu.memory_space<vmem>>, vector<32x35xbf16>
    tpu.vector_store %arg8[%c0_41, %c307], %44 {strides = array<i32>} : memref<32x342xbf16, #tpu.memory_space<vmem>>, vector<32x35xbf16>,
    %c0_42 = arith.constant 0 : index
    %c19_43 = arith.constant 19 : index
    %46 = vector.load %arg8[%c0_42, %c19_43] : memref<32x342xbf16, #tpu.memory_space<vmem>>, vector<32x288xbf16>
    tpu.vector_store %arg8[%c0_42, %c19_43], %41 {strides = array<i32>} : memref<32x342xbf16, #tpu.memory_space<vmem>>, vector<32x288xbf16>,
    %c0_44 = arith.constant 0 : index
    %c0_45 = arith.constant 0 : index
    %47 = vector.load %arg8[%c0_44, %c0_45] : memref<32x342xbf16, #tpu.memory_space<vmem>>, vector<32x288xbf16>
    %c0_46 = arith.constant 0 : index
    %c0_47 = arith.constant 0 : index
    %48 = vector.load %arg7[%c0_46, %c0_47] : memref<288x288xbf16, #tpu.memory_space<vmem>>, vector<32x288xbf16>
    tpu.vector_store %arg7[%c0_46, %c0_47], %47 {strides = array<i32>} : memref<288x288xbf16, #tpu.memory_space<vmem>>, vector<32x288xbf16>,
    %c0_48 = arith.constant 0 : index
    %c1_49 = arith.constant 1 : index
    %49 = vector.load %arg8[%c0_48, %c1_49] : memref<32x342xbf16, #tpu.memory_space<vmem>>, vector<32x288xbf16>
    %c32_50 = arith.constant 32 : index
    %c0_51 = arith.constant 0 : index
    %50 = vector.load %arg7[%c32_50, %c0_51] : memref<288x288xbf16, #tpu.memory_space<vmem>>, vector<32x288xbf16>
    tpu.vector_store %arg7[%c32_50, %c0_51], %49 {strides = array<i32>} : memref<288x288xbf16, #tpu.memory_space<vmem>>, vector<32x288xbf16>,
    %c0_52 = arith.constant 0 : index
    %c2_53 = arith.constant 2 : index
    %51 = vector.load %arg8[%c0_52, %c2_53] : memref<32x342xbf16, #tpu.memory_space<vmem>>, vector<32x288xbf16>
    %c64_54 = arith.constant 64 : index
    %c0_55 = arith.constant 0 : index
    %52 = vector.load %arg7[%c64_54, %c0_55] : memref<288x288xbf16, #tpu.memory_space<vmem>>, vector<32x288xbf16>
    tpu.vector_store %arg7[%c64_54, %c0_55], %51 {strides = array<i32>} : memref<288x288xbf16, #tpu.memory_space<vmem>>, vector<32x288xbf16>,
    %c0_56 = arith.constant 0 : index
    %c18_57 = arith.constant 18 : index
    %53 = vector.load %arg8[%c0_56, %c18_57] : memref<32x342xbf16, #tpu.memory_space<vmem>>, vector<32x288xbf16>
    %c96_58 = arith.constant 96 : index
    %c0_59 = arith.constant 0 : index
    %54 = vector.load %arg7[%c96_58, %c0_59] : memref<288x288xbf16, #tpu.memory_space<vmem>>, vector<32x288xbf16>
    tpu.vector_store %arg7[%c96_58, %c0_59], %53 {strides = array<i32>} : memref<288x288xbf16, #tpu.memory_space<vmem>>, vector<32x288xbf16>,
    %c0_60 = arith.constant 0 : index
    %c19_61 = arith.constant 19 : index
    %55 = vector.load %arg8[%c0_60, %c19_61] : memref<32x342xbf16, #tpu.memory_space<vmem>>, vector<32x288xbf16>
    %c128_62 = arith.constant 128 : index
    %c0_63 = arith.constant 0 : index
    %56 = vector.load %arg7[%c128_62, %c0_63] : memref<288x288xbf16, #tpu.memory_space<vmem>>, vector<32x288xbf16>
    tpu.vector_store %arg7[%c128_62, %c0_63], %55 {strides = array<i32>} : memref<288x288xbf16, #tpu.memory_space<vmem>>, vector<32x288xbf16>,
    %c0_64 = arith.constant 0 : index
    %c20_65 = arith.constant 20 : index
    %57 = vector.load %arg8[%c0_64, %c20_65] : memref<32x342xbf16, #tpu.memory_space<vmem>>, vector<32x288xbf16>
    %c160_66 = arith.constant 160 : index
    %c0_67 = arith.constant 0 : index
    %58 = vector.load %arg7[%c160_66, %c0_67] : memref<288x288xbf16, #tpu.memory_space<vmem>>, vector<32x288xbf16>
    tpu.vector_store %arg7[%c160_66, %c0_67], %57 {strides = array<i32>} : memref<288x288xbf16, #tpu.memory_space<vmem>>, vector<32x288xbf16>,
    %c0_68 = arith.constant 0 : index
    %c36_69 = arith.constant 36 : index
    %59 = vector.load %arg8[%c0_68, %c36_69] : memref<32x342xbf16, #tpu.memory_space<vmem>>, vector<32x288xbf16>
    %c192_70 = arith.constant 192 : index
    %c0_71 = arith.constant 0 : index
    %60 = vector.load %arg7[%c192_70, %c0_71] : memref<288x288xbf16, #tpu.memory_space<vmem>>, vector<32x288xbf16>
    tpu.vector_store %arg7[%c192_70, %c0_71], %59 {strides = array<i32>} : memref<288x288xbf16, #tpu.memory_space<vmem>>, vector<32x288xbf16>,
    %c0_72 = arith.constant 0 : index
    %c37_73 = arith.constant 37 : index
    %61 = vector.load %arg8[%c0_72, %c37_73] : memref<32x342xbf16, #tpu.memory_space<vmem>>, vector<32x288xbf16>
    %c224_74 = arith.constant 224 : index
    %c0_75 = arith.constant 0 : index
    %62 = vector.load %arg7[%c224_74, %c0_75] : memref<288x288xbf16, #tpu.memory_space<vmem>>, vector<32x288xbf16>
    tpu.vector_store %arg7[%c224_74, %c0_75], %61 {strides = array<i32>} : memref<288x288xbf16, #tpu.memory_space<vmem>>, vector<32x288xbf16>,
    %c0_76 = arith.constant 0 : index
    %c38_77 = arith.constant 38 : index
    %63 = vector.load %arg8[%c0_76, %c38_77] : memref<32x342xbf16, #tpu.memory_space<vmem>>, vector<32x288xbf16>
    %c256_78 = arith.constant 256 : index
    %c0_79 = arith.constant 0 : index
    %64 = vector.load %arg7[%c256_78, %c0_79] : memref<288x288xbf16, #tpu.memory_space<vmem>>, vector<32x288xbf16>
    tpu.vector_store %arg7[%c256_78, %c0_79], %63 {strides = array<i32>} : memref<288x288xbf16, #tpu.memory_space<vmem>>, vector<32x288xbf16>,
    %c0_80 = arith.constant 0 : index
    %c0_81 = arith.constant 0 : index
    %65 = vector.load %arg4[%c0_80, %c0_81] : memref<8x288xbf16, #tpu.memory_space<vmem>>, vector<8x288xbf16>
    %c0_82 = arith.constant 0 : index
    %c0_83 = arith.constant 0 : index
    %66 = vector.load %arg7[%c0_82, %c0_83] : memref<288x288xbf16, #tpu.memory_space<vmem>>, vector<288x288xbf16>
    %cst_84 = arith.constant dense<0.000000e+00> : vector<8x288xf32>
    %67 = tpu.matmul %65, %66, %cst_84 {dimension_numbers = #tpu.dot_dimension_numbers<[1], [0], [0], [1], [0, 0, 1, 1], [], []>} : vector<8x288xbf16>, vector<288x288xbf16>, vector<8x288xf32> -> vector<8x288xf32>
    %c0_85 = arith.constant 0 : index
    %c0_86 = arith.constant 0 : index
    %68 = vector.load %arg5[%c0_85, %c0_86] : memref<8x1xf32, #tpu.memory_space<vmem>>, vector<8x1xf32>
    %69 = vector.broadcast %68 : vector<8x1xf32> to vector<8x288xf32>
    %70 = arith.addf %67, %69 : vector<8x288xf32>
    %cst_87 = arith.constant 0.000000e+00 : f32
    %71 = vector.broadcast %cst_87 : f32 to vector<8x288xf32>
    %72 = arith.maximumf %70, %71 : vector<8x288xf32>
    %c0_88 = arith.constant 0 : index
    %c0_89 = arith.constant 0 : index
    %73 = vector.load %arg9[%c0_88, %c0_89] : memref<8x288xf32, #tpu.memory_space<vmem>>, vector<8x288xf32>
    tpu.vector_store %arg9[%c0_88, %c0_89], %72 {strides = array<i32>} : memref<8x288xf32, #tpu.memory_space<vmem>>, vector<8x288xf32>,
    %c0_90 = arith.constant 0 : index
    %c0_91 = arith.constant 0 : index
    %74 = vector.load %arg9[%c0_90, %c0_91] : memref<8x288xf32, #tpu.memory_space<vmem>>, vector<8x16xf32>
    %c0_92 = arith.constant 0 : index
    %c0_93 = arith.constant 0 : index
    %c0_94 = arith.constant 0 : index
    %75 = vector.load %arg6[%c0_92, %c0_93, %c0_94] : memref<1x8x256xf32, #tpu.memory_space<vmem>>, vector<1x8x16xf32>
    %76 = vector.shape_cast %75 : vector<1x8x16xf32> to vector<8x16xf32>
    %77 = vector.shape_cast %74 : vector<8x16xf32> to vector<1x8x16xf32>
    tpu.vector_store %arg6[%c0_92, %c0_93, %c0_94], %77 {strides = array<i32>} : memref<1x8x256xf32, #tpu.memory_space<vmem>>, vector<1x8x16xf32>,
    %c0_95 = arith.constant 0 : index
    %c18_96 = arith.constant 18 : index
    %78 = vector.load %arg9[%c0_95, %c18_96] : memref<8x288xf32, #tpu.memory_space<vmem>>, vector<8x16xf32>
    %c0_97 = arith.constant 0 : index
    %c0_98 = arith.constant 0 : index
    %c16 = arith.constant 16 : index
    %79 = vector.load %arg6[%c0_97, %c0_98, %c16] : memref<1x8x256xf32, #tpu.memory_space<vmem>>, vector<1x8x16xf32>
    %80 = vector.shape_cast %79 : vector<1x8x16xf32> to vector<8x16xf32>
    %81 = vector.shape_cast %78 : vector<8x16xf32> to vector<1x8x16xf32>
    tpu.vector_store %arg6[%c0_97, %c0_98, %c16], %81 {strides = array<i32>} : memref<1x8x256xf32, #tpu.memory_space<vmem>>, vector<1x8x16xf32>,
    %c0_99 = arith.constant 0 : index
    %c36_100 = arith.constant 36 : index
    %82 = vector.load %arg9[%c0_99, %c36_100] : memref<8x288xf32, #tpu.memory_space<vmem>>, vector<8x16xf32>
    %c0_101 = arith.constant 0 : index
    %c0_102 = arith.constant 0 : index
    %c32_103 = arith.constant 32 : index
    %83 = vector.load %arg6[%c0_101, %c0_102, %c32_103] : memref<1x8x256xf32, #tpu.memory_space<vmem>>, vector<1x8x16xf32>
    %84 = vector.shape_cast %83 : vector<1x8x16xf32> to vector<8x16xf32>
    %85 = vector.shape_cast %82 : vector<8x16xf32> to vector<1x8x16xf32>
    tpu.vector_store %arg6[%c0_101, %c0_102, %c32_103], %85 {strides = array<i32>} : memref<1x8x256xf32, #tpu.memory_space<vmem>>, vector<1x8x16xf32>,
    %c0_104 = arith.constant 0 : index
    %c54 = arith.constant 54 : index
    %86 = vector.load %arg9[%c0_104, %c54] : memref<8x288xf32, #tpu.memory_space<vmem>>, vector<8x16xf32>
    %c0_105 = arith.constant 0 : index
    %c0_106 = arith.constant 0 : index
    %c48 = arith.constant 48 : index
    %87 = vector.load %arg6[%c0_105, %c0_106, %c48] : memref<1x8x256xf32, #tpu.memory_space<vmem>>, vector<1x8x16xf32>
    %88 = vector.shape_cast %87 : vector<1x8x16xf32> to vector<8x16xf32>
    %89 = vector.shape_cast %86 : vector<8x16xf32> to vector<1x8x16xf32>
    tpu.vector_store %arg6[%c0_105, %c0_106, %c48], %89 {strides = array<i32>} : memref<1x8x256xf32, #tpu.memory_space<vmem>>, vector<1x8x16xf32>,
    %c0_107 = arith.constant 0 : index
    %c72 = arith.constant 72 : index
    %90 = vector.load %arg9[%c0_107, %c72] : memref<8x288xf32, #tpu.memory_space<vmem>>, vector<8x16xf32>
    %c0_108 = arith.constant 0 : index
    %c0_109 = arith.constant 0 : index
    %c64_110 = arith.constant 64 : index
    %91 = vector.load %arg6[%c0_108, %c0_109, %c64_110] : memref<1x8x256xf32, #tpu.memory_space<vmem>>, vector<1x8x16xf32>
    %92 = vector.shape_cast %91 : vector<1x8x16xf32> to vector<8x16xf32>
    %93 = vector.shape_cast %90 : vector<8x16xf32> to vector<1x8x16xf32>
    tpu.vector_store %arg6[%c0_108, %c0_109, %c64_110], %93 {strides = array<i32>} : memref<1x8x256xf32, #tpu.memory_space<vmem>>, vector<1x8x16xf32>,
    %c0_111 = arith.constant 0 : index
    %c90 = arith.constant 90 : index
    %94 = vector.load %arg9[%c0_111, %c90] : memref<8x288xf32, #tpu.memory_space<vmem>>, vector<8x16xf32>
    %c0_112 = arith.constant 0 : index
    %c0_113 = arith.constant 0 : index
    %c80 = arith.constant 80 : index
    %95 = vector.load %arg6[%c0_112, %c0_113, %c80] : memref<1x8x256xf32, #tpu.memory_space<vmem>>, vector<1x8x16xf32>
    %96 = vector.shape_cast %95 : vector<1x8x16xf32> to vector<8x16xf32>
    %97 = vector.shape_cast %94 : vector<8x16xf32> to vector<1x8x16xf32>
    tpu.vector_store %arg6[%c0_112, %c0_113, %c80], %97 {strides = array<i32>} : memref<1x8x256xf32, #tpu.memory_space<vmem>>, vector<1x8x16xf32>,
    %c0_114 = arith.constant 0 : index
    %c108 = arith.constant 108 : index
    %98 = vector.load %arg9[%c0_114, %c108] : memref<8x288xf32, #tpu.memory_space<vmem>>, vector<8x16xf32>
    %c0_115 = arith.constant 0 : index
    %c0_116 = arith.constant 0 : index
    %c96_117 = arith.constant 96 : index
    %99 = vector.load %arg6[%c0_115, %c0_116, %c96_117] : memref<1x8x256xf32, #tpu.memory_space<vmem>>, vector<1x8x16xf32>
    %100 = vector.shape_cast %99 : vector<1x8x16xf32> to vector<8x16xf32>
    %101 = vector.shape_cast %98 : vector<8x16xf32> to vector<1x8x16xf32>
    tpu.vector_store %arg6[%c0_115, %c0_116, %c96_117], %101 {strides = array<i32>} : memref<1x8x256xf32, #tpu.memory_space<vmem>>, vector<1x8x16xf32>,
    %c0_118 = arith.constant 0 : index
    %c126 = arith.constant 126 : index
    %102 = vector.load %arg9[%c0_118, %c126] : memref<8x288xf32, #tpu.memory_space<vmem>>, vector<8x16xf32>
    %c0_119 = arith.constant 0 : index
    %c0_120 = arith.constant 0 : index
    %c112 = arith.constant 112 : index
    %103 = vector.load %arg6[%c0_119, %c0_120, %c112] : memref<1x8x256xf32, #tpu.memory_space<vmem>>, vector<1x8x16xf32>
    %104 = vector.shape_cast %103 : vector<1x8x16xf32> to vector<8x16xf32>
    %105 = vector.shape_cast %102 : vector<8x16xf32> to vector<1x8x16xf32>
    tpu.vector_store %arg6[%c0_119, %c0_120, %c112], %105 {strides = array<i32>} : memref<1x8x256xf32, #tpu.memory_space<vmem>>, vector<1x8x16xf32>,
    %c0_121 = arith.constant 0 : index
    %c144 = arith.constant 144 : index
    %106 = vector.load %arg9[%c0_121, %c144] : memref<8x288xf32, #tpu.memory_space<vmem>>, vector<8x16xf32>
    %c0_122 = arith.constant 0 : index
    %c0_123 = arith.constant 0 : index
    %c128_124 = arith.constant 128 : index
    %107 = vector.load %arg6[%c0_122, %c0_123, %c128_124] : memref<1x8x256xf32, #tpu.memory_space<vmem>>, vector<1x8x16xf32>
    %108 = vector.shape_cast %107 : vector<1x8x16xf32> to vector<8x16xf32>
    %109 = vector.shape_cast %106 : vector<8x16xf32> to vector<1x8x16xf32>
    tpu.vector_store %arg6[%c0_122, %c0_123, %c128_124], %109 {strides = array<i32>} : memref<1x8x256xf32, #tpu.memory_space<vmem>>, vector<1x8x16xf32>,
    %c0_125 = arith.constant 0 : index
    %c162 = arith.constant 162 : index
    %110 = vector.load %arg9[%c0_125, %c162] : memref<8x288xf32, #tpu.memory_space<vmem>>, vector<8x16xf32>
    %c0_126 = arith.constant 0 : index
    %c0_127 = arith.constant 0 : index
    %c144_128 = arith.constant 144 : index
    %111 = vector.load %arg6[%c0_126, %c0_127, %c144_128] : memref<1x8x256xf32, #tpu.memory_space<vmem>>, vector<1x8x16xf32>
    %112 = vector.shape_cast %111 : vector<1x8x16xf32> to vector<8x16xf32>
    %113 = vector.shape_cast %110 : vector<8x16xf32> to vector<1x8x16xf32>
    tpu.vector_store %arg6[%c0_126, %c0_127, %c144_128], %113 {strides = array<i32>} : memref<1x8x256xf32, #tpu.memory_space<vmem>>, vector<1x8x16xf32>,
    %c0_129 = arith.constant 0 : index
    %c180 = arith.constant 180 : index
    %114 = vector.load %arg9[%c0_129, %c180] : memref<8x288xf32, #tpu.memory_space<vmem>>, vector<8x16xf32>
    %c0_130 = arith.constant 0 : index
    %c0_131 = arith.constant 0 : index
    %c160_132 = arith.constant 160 : index
    %115 = vector.load %arg6[%c0_130, %c0_131, %c160_132] : memref<1x8x256xf32, #tpu.memory_space<vmem>>, vector<1x8x16xf32>
    %116 = vector.shape_cast %115 : vector<1x8x16xf32> to vector<8x16xf32>
    %117 = vector.shape_cast %114 : vector<8x16xf32> to vector<1x8x16xf32>
    tpu.vector_store %arg6[%c0_130, %c0_131, %c160_132], %117 {strides = array<i32>} : memref<1x8x256xf32, #tpu.memory_space<vmem>>, vector<1x8x16xf32>,
    %c0_133 = arith.constant 0 : index
    %c198 = arith.constant 198 : index
    %118 = vector.load %arg9[%c0_133, %c198] : memref<8x288xf32, #tpu.memory_space<vmem>>, vector<8x16xf32>
    %c0_134 = arith.constant 0 : index
    %c0_135 = arith.constant 0 : index
    %c176 = arith.constant 176 : index
    %119 = vector.load %arg6[%c0_134, %c0_135, %c176] : memref<1x8x256xf32, #tpu.memory_space<vmem>>, vector<1x8x16xf32>
    %120 = vector.shape_cast %119 : vector<1x8x16xf32> to vector<8x16xf32>
    %121 = vector.shape_cast %118 : vector<8x16xf32> to vector<1x8x16xf32>
    tpu.vector_store %arg6[%c0_134, %c0_135, %c176], %121 {strides = array<i32>} : memref<1x8x256xf32, #tpu.memory_space<vmem>>, vector<1x8x16xf32>,
    %c0_136 = arith.constant 0 : index
    %c216 = arith.constant 216 : index
    %122 = vector.load %arg9[%c0_136, %c216] : memref<8x288xf32, #tpu.memory_space<vmem>>, vector<8x16xf32>
    %c0_137 = arith.constant 0 : index
    %c0_138 = arith.constant 0 : index
    %c192_139 = arith.constant 192 : index
    %123 = vector.load %arg6[%c0_137, %c0_138, %c192_139] : memref<1x8x256xf32, #tpu.memory_space<vmem>>, vector<1x8x16xf32>
    %124 = vector.shape_cast %123 : vector<1x8x16xf32> to vector<8x16xf32>
    %125 = vector.shape_cast %122 : vector<8x16xf32> to vector<1x8x16xf32>
    tpu.vector_store %arg6[%c0_137, %c0_138, %c192_139], %125 {strides = array<i32>} : memref<1x8x256xf32, #tpu.memory_space<vmem>>, vector<1x8x16xf32>,
    %c0_140 = arith.constant 0 : index
    %c234 = arith.constant 234 : index
    %126 = vector.load %arg9[%c0_140, %c234] : memref<8x288xf32, #tpu.memory_space<vmem>>, vector<8x16xf32>
    %c0_141 = arith.constant 0 : index
    %c0_142 = arith.constant 0 : index
    %c208 = arith.constant 208 : index
    %127 = vector.load %arg6[%c0_141, %c0_142, %c208] : memref<1x8x256xf32, #tpu.memory_space<vmem>>, vector<1x8x16xf32>
    %128 = vector.shape_cast %127 : vector<1x8x16xf32> to vector<8x16xf32>
    %129 = vector.shape_cast %126 : vector<8x16xf32> to vector<1x8x16xf32>
    tpu.vector_store %arg6[%c0_141, %c0_142, %c208], %129 {strides = array<i32>} : memref<1x8x256xf32, #tpu.memory_space<vmem>>, vector<1x8x16xf32>,
    %c0_143 = arith.constant 0 : index
    %c252 = arith.constant 252 : index
    %130 = vector.load %arg9[%c0_143, %c252] : memref<8x288xf32, #tpu.memory_space<vmem>>, vector<8x16xf32>
    %c0_144 = arith.constant 0 : index
    %c0_145 = arith.constant 0 : index
    %c224_146 = arith.constant 224 : index
    %131 = vector.load %arg6[%c0_144, %c0_145, %c224_146] : memref<1x8x256xf32, #tpu.memory_space<vmem>>, vector<1x8x16xf32>
    %132 = vector.shape_cast %131 : vector<1x8x16xf32> to vector<8x16xf32>
    %133 = vector.shape_cast %130 : vector<8x16xf32> to vector<1x8x16xf32>
    tpu.vector_store %arg6[%c0_144, %c0_145, %c224_146], %133 {strides = array<i32>} : memref<1x8x256xf32, #tpu.memory_space<vmem>>, vector<1x8x16xf32>,
    %c0_147 = arith.constant 0 : index
    %c270 = arith.constant 270 : index
    %134 = vector.load %arg9[%c0_147, %c270] : memref<8x288xf32, #tpu.memory_space<vmem>>, vector<8x16xf32>
    %c0_148 = arith.constant 0 : index
    %c0_149 = arith.constant 0 : index
    %c240 = arith.constant 240 : index
    %135 = vector.load %arg6[%c0_148, %c0_149, %c240] : memref<1x8x256xf32, #tpu.memory_space<vmem>>, vector<1x8x16xf32>
    %136 = vector.shape_cast %135 : vector<1x8x16xf32> to vector<8x16xf32>
    %137 = vector.shape_cast %134 : vector<8x16xf32> to vector<1x8x16xf32>
    tpu.vector_store %arg6[%c0_148, %c0_149, %c240], %137 {strides = array<i32>} : memref<1x8x256xf32, #tpu.memory_space<vmem>>, vector<1x8x16xf32>,
    return
  }
  func.func @transform_0(%arg0: i32) -> (i32, i32, i32) {
    %c0_i32 = arith.constant 0 : i32
    %c0_i32_0 = arith.constant 0 : i32
    %c0_i32_1 = arith.constant 0 : i32
    return %arg0, %c0_i32, %c0_i32_0 : i32, i32, i32
  }
  func.func @transform_1(%arg0: i32) -> (i32, i32) {
    %c0_i32 = arith.constant 0 : i32
    %c0_i32_0 = arith.constant 0 : i32
    %c0_i32_1 = arith.constant 0 : i32
    return %c0_i32, %c0_i32_0 : i32, i32
  }
  func.func @transform_2(%arg0: i32) -> (i32, i32) {
    %c0_i32 = arith.constant 0 : i32
    %c0_i32_0 = arith.constant 0 : i32
    %c0_i32_1 = arith.constant 0 : i32
    return %c0_i32, %c0_i32_0 : i32, i32
  }
  func.func @transform_3(%arg0: i32) -> (i32, i32) {
    %c0_i32 = arith.constant 0 : i32
    %c0_i32_0 = arith.constant 0 : i32
    %c0_i32_1 = arith.constant 0 : i32
    return %c0_i32, %c0_i32_0 : i32, i32
  }
  func.func @transform_4(%arg0: i32) -> (i32, i32) {
    %c0_i32 = arith.constant 0 : i32
    %c0_i32_0 = arith.constant 0 : i32
    %c0_i32_1 = arith.constant 0 : i32
    return %c0_i32, %c0_i32_0 : i32, i32
  }
  func.func @transform_5(%arg0: i32) -> (i32, i32, i32) {
    %c0_i32 = arith.constant 0 : i32
    %c0_i32_0 = arith.constant 0 : i32
    %c0_i32_1 = arith.constant 0 : i32
    return %arg0, %c0_i32, %c0_i32_0 : i32, i32, i32
  }
}

</mosaic_0001>

<bundles_post_ra>
// kernel: tpu_custom_call.1
= control target key start
LH: loop header
LB: loop body
LE: loop exit
PB: predicated region body
PF: predicated region fallthrough
CT: control target
= control target key end

     0   :  { %10 = vsyncpa [#allocation6], 0  ;;  %s3219_s0 = inlined_call_operand.hbm [shape: bf16[2,32,342], index: 0, kind: input, shape index: {}]   ;;  %s3220_s1 = inlined_call_operand.hbm [shape: bf16[32,288], index: 1, kind: input, shape index: {}]   ;;  %s3221_s2 = inlined_call_operand.vmem [shape: f32[32,1], index: 2, kind: input, shape index: {}]   ;;  %s3222_s3 = inlined_call_operand.vmem [shape: bf16[8,288], index: 3, kind: input, shape index: {}]   ;;  %s3223_s4 = inlined_call_operand.vmem [shape: f32[8,1], index: 4, kind: input, shape index: {}]   ;;  %s3224_s5 = inlined_call_operand.hbm [shape: f32[2,8,256], index: 5, kind: output, shape index: {}]  }
   0x1   :  { %12 = vsyncpa [#allocation6 + $0x1], 0 }
   0x2   :  { %13 = vsyncpa [#allocation9], 0 }
   0x3   :  { %14 = vsyncpa [#allocation7], 0 }
   0x4   :  { %16 = vsyncpa [#allocation7 + $0x1], 0  ;;  %s2619_s18 = smov 0   ;;  %s2621_s19 = smov 0  }
   0x5   :  { %s2623_s20 = smov 0   ;;  %s2625_s21 = smov 0  }
   0x6 LB: > { %s2640_s22 = sadd.s32 4294967295, %s2558_s21   ;;  %s2069_s23 = sadd.s32 4294967294, %s2558_s21   ;;  %s2558_s21 = sphi %s2625_s21, %s3249_s21   ;;  %s2554_s20 = sphi %s2623_s20, %s3248_s20   ;;  %s2550_s19 = sphi %s2621_s19, %s3247_s19   ;;  %s2546_s18 = sphi %s2619_s18, %s3246_s18  }
   0x7   : > { %p42_p0 = scmp.ne.s32.totalorder %s2550_s19, %s2546_s18  ;;  %p3225_p1 = scmp.eq.s32.totalorder %s2640_s22, 0 }
   0x8   : > { %p156_p3 = scmp.eq.s32.totalorder %s2069_s23, 1  ;;  %p2070_p5 = scmp.ge.s32.totalorder %s2558_s21, 1 }
   0x9   : > { %p2649_p4 = por %p3225_p1, %p42_p0  ;;  %p163_p7 = scmp.lt.s32.totalorder %s2558_s21, 3 }
   0xa   : > { %p2654_p6 = por %p156_p3, %p42_p0  ;;  %s2560_s27 = smov [#allocation8]  }
   0xb   : > { %s3231_s24 = scalar_select %p2649_p4, 1, 0 }
   0xc   : > { %s3232_s25 = scalar_select %p2654_p6, 1, 0 }
   0xd   : > { %p2659_p8 = pnand %p2070_p5, %p163_p7  ;;  %s175_s28 = sshll.u32 %s2560_s27, 4  ;;  %s2663_s28 = int_to_ptr.vmem [resolvable:$true] %s175_s28 }
   0xe   : > { %s2675_s30 = sadd.s32 1, %s2558_s21   ;;  %s29_s6 = sadd.s32 1, %s2554_s20 }
   0xf   : > { %s3233_s26 = scalar_select %p2659_p8, 1, 0 }
  0x10   : > { %p2270_p9 = pneg %p2659_p8  ;;  %s26_s7 = ssub.s32 %s2558_s21, %s2675_s30 }
  0x11   : > { %s2430_s10 = scalar_lea.hbm %s3220_s1, 768 }
  0x12   : > { %p2670_p11 = pnand %p2270_p9, %p3225_p1  ;;  %p2431_p12 = scmp.ne.s32.totalorder %s3220_s1, %s2430_s10 }
  0x13   : > { %p2437_p5 = scmp.lt.u32.totalorder %s2430_s10, %s3220_s1 }
  0x14   : > { %p2432_p13 = pneg %p2670_p11 }
  0x16   : > { %p2433_p0 = pnand %p2432_p13, %p2431_p12 }
  0x18   : > { %p2434_p3 = pneg %p2433_p0 }
  0x1a   : > { %p2439_p7 = pnand %p2437_p5, %p2434_p3 }
  0x1c   : > { %2442 = shalt.err (!%p2439_p7)
}
  0x1d   : > { %s2443_s15 = scalar_lea.vmem %s2663_s28, 768  ;;  %p2451_p2 = scmp.lt.s32.totalorder %s2663_s28, %s2663_s28 }
  0x1e   : > { %p2444_p9 = scmp.ne.s32.totalorder %s2663_s28, %s2443_s15  ;;  %p2452_p6 = scmp.lt.s32.totalorder %s2443_s15, %s2443_s15 }
  0x20   : > { %p2446_p10 = pnand %p2444_p9, %p2432_p13  ;;  %p2453_p4 = por %p2452_p6, %p2451_p2 }
  0x22   : > { %p2447_p1 = pneg %p2446_p10 }
  0x24   : > { %p2454_p8 = pnand %p2453_p4, %p2447_p1 }
  0x26   : > { %2457 = shalt.err (!%p2454_p8)
}
  0x27   : > { %s3228_s16 = smov 192   ;;  %s2562_s17 = smov 12  }
  0x28   : > { %2273 = dma.hbm_to_vmem [thread:$0]  (!%p2670_p11), %s3220_s1, 768, %s2663_s28, [#allocation9], %s3228_s16, %s3228_s16, %s2562_s17  }
  0x29   : > { %p27_p1 = scmp.eq.s32.totalorder %s26_s7, 0  ;;  %p36_p2 = scmp.ne.s32.totalorder %s2554_s20, %s2550_s19 }
  0x2a   : > { %p37_p4 = scmp.eq.s32.totalorder %s2558_s21, 0  ;;  %p2283_p6 = scmp.lt.s32.totalorder %s2558_s21, 2 }
  0x2b   : > { %s2709_s8 = scalar_select %p27_p1, %s2554_s20, %s29_s6  }
  0x2c   : > { %p38_p8 = por %p37_p4, %p36_p2  ;;  %p3235_p10 = scmp.eq.s32.totalorder %s2640_s22, 1 }
  0x2d   : > { %s198_s29 = sand.u32 1, %s2554_s20   ;;  %s2260_s10 = smul.u32 768, %s2558_s21 }
  0x2e   : > { %p2713_p12 = por %p3235_p10, %p36_p2  ;;  %s2259_s11 = smul.u32 48, %s198_s29 }
  0x2f   : > { %p2719_p13 = pnand %p2283_p6, %p38_p8  ;;  %s2726_s6 = scalar_lea.hbm %s3219_s0, %s2260_s10 }
  0x30   : > { %s202_s13 = scalar_lea.vmem [#allocation5], %s2259_s11  ;;  %s2730_s15 = scalar_lea.sflag [#allocation6], %s198_s29 }
  0x31   : > { %s209_s14 = sshll.u32 %s202_s13, 4  ;;  %s2458_s23 = scalar_lea.hbm %s2726_s6, 768  ;;  %s2728_s14 = int_to_ptr.vmem [resolvable:$true] %s209_s14 }
  0x32   : > { %p2459_p11 = scmp.ne.s32.totalorder %s2726_s6, %s2458_s23  ;;  %p2460_p0 = pneg %p2719_p13 }
  0x33   : > { %s2463_s28 = scalar_lea.hbm %s3219_s0, 1536  ;;  %p2464_p7 = scmp.lt.u32.totalorder %s2726_s6, %s3219_s0 }
  0x34   : > { %p2461_p3 = pnand %p2460_p0, %p2459_p11  ;;  %p2465_p9 = scmp.lt.u32.totalorder %s2463_s28, %s2458_s23 }
  0x35   : > { %p2467_p2 = scmp.lt.u32.totalorder %s2458_s23, %s2726_s6 }
  0x36   : > { %p2462_p5 = pneg %p2461_p3  ;;  %p2466_p1 = por %p2465_p9, %p2464_p7 }
  0x38   : > { %p2468_p4 = por %p2467_p2, %p2466_p1 }
  0x3a   : > { %p2469_p6 = pnand %p2468_p4, %p2462_p5 }
  0x3c   : > { %2472 = shalt.err (!%p2469_p6)
}
  0x3d   : > { %s2473_s29 = scalar_lea.vmem %s2728_s14, 768  ;;  %s2563_s11 = smov [#allocation5]  }
  0x3e   : > { %p2474_p8 = scmp.ne.s32.totalorder %s2728_s14, %s2473_s29  ;;  %s2478_s13 = sshll.u32 %s2563_s11, 4  ;;  %s2479_s13 = int_to_ptr.vmem [resolvable:$false] %s2478_s13 }
  0x3f   : > { %s2480_s16 = scalar_lea.vmem %s2479_s13, 1536  ;;  %p2481_p3 = scmp.lt.s32.totalorder %s2728_s14, %s2479_s13 }
  0x40   : > { %p2476_p10 = pnand %p2474_p8, %p2460_p0  ;;  %p2482_p7 = scmp.lt.s32.totalorder %s2480_s16, %s2473_s29 }
  0x42   : > { %p2477_p11 = pneg %p2476_p10  ;;  %p2483_p9 = por %p2482_p7, %p2481_p3 }
  0x44   : > { %p2484_p1 = pnand %p2483_p9, %p2477_p11 }
  0x46   : > { %2487 = shalt.err (!%p2484_p1)
}
  0x47   : > { %s3238_s23 = smov 192   ;;  %p3239_p0 = scmp.ne.s32.totalorder %s3233_s26, 0 }
  0x48   : > { %2277 = dma.hbm_to_vmem [thread:$0]  (!%p2719_p13), %s2726_s6, 768, %s2728_s14, %s2730_s15, %s3238_s23, %s3238_s23, %s2562_s17  }
  0x49   : > { %221 = sbr.rel (%p3239_p0) target bundleno = 1285 (0x505), region = 40  ;;  %s2764_s27 = sand.u32 (!%p3239_p0), 1, %s2550_s19  }
  0x4a   : > { %s2261_s10 = smul.u32 (!%p3239_p0), 48, %s2764_s27  ;;  %s224_s28 = scalar_lea.sflag (!%p3239_p0), [#allocation6], %s2764_s27 }
  0x4b   : > { %p3240_p5 = scmp.ne.s32.totalorder (!%p3239_p0), %s3231_s24, 0 }
  0x4c   : > { %s2768_s7 = scalar_lea.vmem (!%p3239_p0), [#allocation5], %s2261_s10 }
  0x50   : > { %2533 = dma.done.wait (%p3240_p5), %s224_s28, 768  }
  0x51   : > { %2535 = vsyncadd (%p3240_p5), %s224_s28, 4294966528  ;;  %p3241_p13 = scmp.eq.s32.totalorder %s2640_s22, 0 }
  0x53   : > { %2537 = dma.done.wait (%p3241_p13), [#allocation9], 768   ;;  %p3242_p2 = pmov %p3241_p13 }
  0x54   : > { %v2779_v0 = vld [vmem:[%s2768_s7 + $0x4] ss:$12 sps:$4 sm:$0xff]   ;;  %v2782_v1 = vld [vmem:[%s2768_s7] ss:$12 sps:$4 sm:$0xff]   ;;  %s2564_s26 = smov 127   ;;  %s2565_s24 = smov 126  }
  0x55   : > { %2539 = vsyncadd (%p3242_p2), [#allocation9], 4294966528  ;;  %342 = vrot.lane.b32.xlu0 %v2779_v0, %s2564_s26  ;;  %v2350_v2 = vld [vmem:[%s2768_s7 + $0x8] ss:$12 sps:$4 sm:$0xff]   ;;  %932 = vmatprep.subr.bf16.mxu0 %v2779_v0  ;;  %v2795_v4 = vld [vmem:[%s2768_s7 + $0x18] ss:$12 sps:$4 sm:$0xff]  }
  0x56   : > { %340 = vrot.lane.b32.xlu1 %v2782_v1, %s2564_s26  ;;  %v2791_v3 = vld [vmem:[%s2768_s7 + $0x1c] ss:$12 sps:$4 sm:$0xff]   ;;  %933 = vmatpush1.bf16.msra.mxu0 %v2782_v1  ;;  %v2353_v5 = vld [vmem:[%s2768_s7 + $0x20] ss:$12 sps:$4 sm:$0xff]   ;;  %s2566_s17 = smov 110   ;;  %vm301_vm0 = vcmask 261120  }
  0x57   : > { %934 = vmatprep.subr.bf16.mxu0 %v2791_v3  ;;  %v2355_v6 = vld [vmem:[%s2768_s7 + $0x8] ss:$12 sps:$4 sm:$0xff]   ;;  %v2356_v7 = vld [vmem:[%s2768_s7 + $0x20] ss:$12 sps:$4 sm:$0xff]   ;;  %s2567_s12 = smov 109   ;;  %s2568_s6 = smov 108  }
  0x58   : > { %v2357_v8 = vld [vmem:[%s2768_s7 + $0x8] ss:$12 sps:$4 sm:$0xff]   ;;  %v2358_v10 = vld [vmem:[%s2768_s7 + $0x20] ss:$12 sps:$4 sm:$0xff]   ;;  %s2569_s14 = smov 92   ;;  %s3229_s15 = smov 91  }
  0x59   : > { %344 = vrot.lane.b32.xlu0 %v2350_v2, %s2564_s26  ;;  %v2369_v9 = vld [vmem:[%s2768_s7 + $0x8] ss:$12 sps:$4 sm:$0xff]   ;;  %v2370_v11 = vld [vmem:[%s2768_s7 + $0x20] ss:$12 sps:$4 sm:$0xff]   ;;  %s2571_s29 = smov 90   ;;  %v2572_v23 = vmov 0  }
  0x5a   : > { %348 = vrot.lane.b32.xlu1 %v2791_v3, %s2564_s26  ;;  %935 = vmatpush1.bf16.msra.mxu0 %v2795_v4  ;;  %302 = vst.msk [vmem:[#allocation2 + $0x10] sm:$0xff] %vm301_vm0, %v2369_v9  ;;  %v2359_v12 = vld [vmem:[%s2768_s7 + $0x8] ss:$12 sps:$4 sm:$0xff]   ;;  %305 = vst.msk [vmem:[#allocation2 + $0x28] sm:$0xff] %vm301_vm0, %v2370_v11  ;;  %v2360_v13 = vld [vmem:[%s2768_s7 + $0x20] ss:$12 sps:$4 sm:$0xff]  }
  0x5b   : > { %v2361_v14 = vld [vmem:[%s2768_s7 + $0x8] ss:$12 sps:$4 sm:$0xff]   ;;  %v2362_v15 = vld [vmem:[%s2768_s7 + $0x20] ss:$12 sps:$4 sm:$0xff]   ;;  %2346 = vset.pattern.permute.xlu1 %v2572_v23  ;;  %2345 = vset.pattern.permute.xlu0 %v2572_v23  ;;  %vm352_vm1 = vcmask 1039360   ;;  %vm415_vm2 = vcmask 1031168  }
  0x5c   : > { %v2363_v16 = vld [vmem:[%s2768_s7 + $0x8] ss:$12 sps:$4 sm:$0xff]   ;;  %v2364_v17 = vld [vmem:[%s2768_s7 + $0x20] ss:$12 sps:$4 sm:$0xff]   ;;  %vm478_vm3 = vcmask 900096   ;;  %vm541_vm4 = vcmask 891904  }
  0x5d   : > { %350 = vrot.lane.b32.xlu0 %v2353_v5, %s2564_s26  ;;  %v2365_v18 = vld [vmem:[%s2768_s7 + $0x8] ss:$12 sps:$4 sm:$0xff]   ;;  %v2366_v20 = vld [vmem:[%s2768_s7 + $0x20] ss:$12 sps:$4 sm:$0xff]   ;;  %vm604_vm5 = vcmask 883712   ;;  %vm667_vm6 = vcmask 752640  }
  0x5e   : > { %346 = vrot.lane.b32.xlu1 %v2795_v4, %s2564_s26  ;;  %v2373_v19 = vld [vmem:[#allocation8 + $0x4] ss:$12 sps:$4 sm:$0xff]   ;;  %v872_v24 = vld [vmem:[%s3221_s2] sm:$0xff]  ;;  %v874_v26 = vld [vmem:[%s3221_s2 + $0x10] sm:$0xff]  ;;  %vm730_vm7 = vcmask 744448   ;;  %vm793_vm8 = vcmask 736256  }
  0x5f   : > { %1070 = vmatprep.mubr.bf16.mxu1 %v2373_v19  ;;  %964 = vmatprep.mubr.bf16.mxu0 %v2373_v19  ;;  %v2367_v21 = vld [vmem:[%s2768_s7 + $0x8] ss:$12 sps:$4 sm:$0xff]   ;;  %v2368_v22 = vld [vmem:[%s2768_s7 + $0x20] ss:$12 sps:$4 sm:$0xff]   ;;  %vm1244_vm9 = vcmask 154624   ;;  %vm1247_vm10 = vcmask 703896  }
  0x60   : > { %v873_v25 = vld [vmem:[%s3221_s2 + $0x8] sm:$0xff]  ;;  %v875_v27 = vld [vmem:[%s3221_s2 + $0x18] sm:$0xff]  ;;  %1248 = vst.msk [vmem:[#allocation3 + $0x10] sm:$0xff] %vm1247_vm10, %v2572_v23  ;;  %1249 = vst.msk [vmem:[#allocation3 + $0x28] sm:$0xff] %vm1247_vm10, %v2572_v23  ;;  %vm1282_vm11 = vcmask 416768   ;;  %vm1279_vm12 = vcmask 1047704  }
  0x61   : > { %405 = vrot.lane.b32.xlu0 %v2779_v0, %s2565_s24  ;;  %v823_v9 = vld [vmem:[#allocation2 + $0x28] sm:$0xff]  ;;  %1245 = vst.msk [vmem:[#allocation3] sm:$0xff] %vm1244_vm9, %v2572_v23  ;;  %1246 = vst.msk [vmem:[#allocation3 + $0x18] sm:$0xff] %vm1244_vm9, %v2572_v23  ;;  %vm2575_vm13 = vmmov 0   ;;  %s2076_s23 = sshll.u32 %s2764_s27, 4  ;;  %vm1863_vm14 = vcmask 130048  }
  0x62   : > { %407 = vrot.lane.b32.xlu1 %v2355_v6, %s2565_s24  ;;  %s3133_s10 = scalar_lea.vmem [#allocation10], %s2076_s23  ;;  %s2576_s28 = smov 124   ;;  %vm1870_vm15 = vcmask 261248  }
  0x63   : > { %s2577_s7 = smov 122   ;;  %s2582_s11 = smov 116  }
  0x64   : > { %s2584_s13 = smov 106   ;;  %s2586_s16 = smov 102  }
  0x65   : > { %403 = vrot.lane.b32.xlu0 %v2782_v1, %s2565_s24  ;;  %s2587_s23 = smov 98  }
  0x66   : > { %411 = vrot.lane.b32.xlu1 %v2791_v3, %s2565_s24 }
  0x69   : > { %413 = vrot.lane.b32.xlu0 %v2356_v7, %s2565_s24 }
  0x6a   : > { %409 = vrot.lane.b32.xlu1 %v2795_v4, %s2565_s24 }
  0x6d   : > { %468 = vrot.lane.b32.xlu0 %v2779_v0, %s2566_s17 }
  0x6e   : > { %470 = vrot.lane.b32.xlu1 %v2357_v8, %s2566_s17 }
  0x71   : > { %466 = vrot.lane.b32.xlu0 %v2782_v1, %s2566_s17 }
  0x72   : > { %474 = vrot.lane.b32.xlu1 %v2791_v3, %s2566_s17 }
  0x75   : > { %476 = vrot.lane.b32.xlu0 %v2358_v10, %s2566_s17 }
  0x76   : > { %472 = vrot.lane.b32.xlu1 %v2795_v4, %s2566_s17 }
  0x79   : > { %531 = vrot.lane.b32.xlu0 %v2779_v0, %s2567_s12 }
  0x7a   : > { %533 = vrot.lane.b32.xlu1 %v2359_v12, %s2567_s12 }
  0x7d   : > { %529 = vrot.lane.b32.xlu0 %v2782_v1, %s2567_s12 }
  0x7e   : > { %537 = vrot.lane.b32.xlu1 %v2791_v3, %s2567_s12 }
  0x81   : > { %539 = vrot.lane.b32.xlu0 %v2360_v13, %s2567_s12 }
  0x82   : > { %535 = vrot.lane.b32.xlu1 %v2795_v4, %s2567_s12 }
  0x85   : > { %594 = vrot.lane.b32.xlu0 %v2779_v0, %s2568_s6 }
  0x86   : > { %596 = vrot.lane.b32.xlu1 %v2361_v14, %s2568_s6 }
  0x89   : > { %592 = vrot.lane.b32.xlu0 %v2782_v1, %s2568_s6 }
  0x8a   : > { %600 = vrot.lane.b32.xlu1 %v2791_v3, %s2568_s6 }
  0x8d   : > { %602 = vrot.lane.b32.xlu0 %v2362_v15, %s2568_s6 }
  0x8e   : > { %598 = vrot.lane.b32.xlu1 %v2795_v4, %s2568_s6 }
  0x91   : > { %657 = vrot.lane.b32.xlu0 %v2779_v0, %s2569_s14 }
  0x92   : > { %659 = vrot.lane.b32.xlu1 %v2363_v16, %s2569_s14 }
  0x95   : > { %655 = vrot.lane.b32.xlu0 %v2782_v1, %s2569_s14 }
  0x96   : > { %663 = vrot.lane.b32.xlu1 %v2791_v3, %s2569_s14 }
  0x99   : > { %665 = vrot.lane.b32.xlu0 %v2364_v17, %s2569_s14 }
  0x9a   : > { %661 = vrot.lane.b32.xlu1 %v2795_v4, %s2569_s14 }
  0x9d   : > { %720 = vrot.lane.b32.xlu0 %v2779_v0, %s3229_s15 }
  0x9e   : > { %722 = vrot.lane.b32.xlu1 %v2365_v18, %s3229_s15 }
  0xa1   : > { %718 = vrot.lane.b32.xlu0 %v2782_v1, %s3229_s15 }
  0xa2   : > { %726 = vrot.lane.b32.xlu1 %v2791_v3, %s3229_s15 }
  0xa5   : > { %728 = vrot.lane.b32.xlu0 %v2366_v20, %s3229_s15 }
  0xa6   : > { %724 = vrot.lane.b32.xlu1 %v2795_v4, %s3229_s15  ;;  %s2573_s15 = smov 19  }
  0xa9   : > { %783 = vrot.lane.b32.xlu0 %v2779_v0, %s2571_s29 }
  0xaa   : > { %785 = vrot.lane.b32.xlu1 %v2367_v21, %s2571_s29 }
  0xad   : > { %781 = vrot.lane.b32.xlu0 %v2782_v1, %s2571_s29  ;;  %v820_v1 = vld [vmem:[#allocation2 + $0x10] sm:$0xff] }
  0xae   : > { %789 = vrot.lane.b32.xlu1 %v2791_v3, %s2571_s29 }
  0xb1   : > { %791 = vrot.lane.b32.xlu0 %v2368_v22, %s2571_s29 }
  0xb2   : > { %787 = vrot.lane.b32.xlu1 %v2795_v4, %s2571_s29 }
  0xb5   : > { %878 = vperm.xlu0 %2345, %v872_v24  }
  0xb6   : > { %883 = vperm.xlu1 %2346, %v873_v25  }
  0xb9   : > { %893 = vperm.xlu0 %2345, %v875_v27  }
  0xba   : > { %888 = vperm.xlu1 %2346, %v874_v26  }
  0xc7   : > { %v343_v28 = vpop.permute.xlu0 %342 }
  0xc8   : > { %v341_v29 = vpop.permute.xlu1 %340 }
  0xc9   : > { %v353_v33 = vsel %vm352_vm1, %v341_v29, %v343_v28 }
  0xcb   : > { %v345_v30 = vpop.permute.xlu0 %344 }
  0xcc   : > { %v354_v31 = vsel %vm352_vm1, %v343_v28, %v345_v30  ;;  %365 = vst.msk [vmem:[#allocation2 + $0x40] sm:$0xff] %vm301_vm0, %v345_v30  ;;  %v349_v32 = vpop.permute.xlu1 %348 }
  0xcd   : > { %936 = vmatprep.subr.bf16.mxu0 %v354_v31 }
  0xce   : > { %937 = vmatpush1.bf16.msra.mxu0 %v353_v33 }
  0xcf   : > { %v351_v34 = vpop.permute.xlu0 %350 }
  0xd0   : > { %v356_v35 = vsel %vm352_vm1, %v349_v32, %v351_v34  ;;  %368 = vst.msk [vmem:[#allocation2 + $0x58] sm:$0xff] %vm301_vm0, %v351_v34  ;;  %v347_v36 = vpop.permute.xlu1 %346 }
  0xd1   : > { %v355_v37 = vsel %vm352_vm1, %v347_v36, %v349_v32  ;;  %938 = vmatprep.subr.bf16.mxu0 %v356_v35 }
  0xd2   : > { %939 = vmatpush1.bf16.msra.mxu0 %v355_v37 }
  0xd3   : > { %v406_v38 = vpop.permute.xlu0 %405  ;;  %v826_v19 = vld [vmem:[#allocation2 + $0x40] sm:$0xff] }
  0xd4   : > { %v408_v39 = vpop.permute.xlu1 %407 }
  0xd5   : > { %v417_v40 = vsel %vm415_vm2, %v406_v38, %v408_v39  ;;  %428 = vst.msk [vmem:[#allocation2 + $0x70] sm:$0xff] %vm301_vm0, %v408_v39 }
  0xd6   : > { %940 = vmatprep.subr.bf16.mxu0 %v417_v40 }
  0xd7   : > { %v404_v41 = vpop.permute.xlu0 %403  ;;  %v829_v28 = vld [vmem:[#allocation2 + $0x58] sm:$0xff] }
  0xd8   : > { %v416_v42 = vsel %vm415_vm2, %v404_v41, %v406_v38  ;;  %v412_v43 = vpop.permute.xlu1 %411 }
  0xd9   : > { %941 = vmatpush1.bf16.msra.mxu0 %v416_v42 }
  0xdb   : > { %v414_v44 = vpop.permute.xlu0 %413 }
  0xdc   : > { %v419_v45 = vsel %vm415_vm2, %v412_v43, %v414_v44  ;;  %431 = vst.msk [vmem:[#allocation2 + $0x88] sm:$0xff] %vm301_vm0, %v414_v44  ;;  %v410_v46 = vpop.permute.xlu1 %409  ;;  %v832_v34 = vld [vmem:[#allocation2 + $0x70] sm:$0xff] }
  0xdd   : > { %v418_v47 = vsel %vm415_vm2, %v410_v46, %v412_v43  ;;  %942 = vmatprep.subr.bf16.mxu0 %v419_v45 }
  0xde   : > { %943 = vmatpush1.bf16.msra.mxu0 %v418_v47 }
  0xdf   : > { %v469_v48 = vpop.permute.xlu0 %468 }
  0xe0   : > { %v471_v49 = vpop.permute.xlu1 %470 }
  0xe1   : > { %v480_v50 = vsel %vm478_vm3, %v469_v48, %v471_v49  ;;  %491 = vst.msk [vmem:[#allocation2 + $0xa0] sm:$0xff] %vm301_vm0, %v471_v49  ;;  %v2371_v49 = vld [vmem:[#allocation8] ss:$12 sps:$4 sm:$0xff]  }
  0xe2   : > { %944 = vmatprep.subr.bf16.mxu0 %v480_v50  ;;  %v2374_v50 = vld [vmem:[#allocation8 + $0x1c] ss:$12 sps:$4 sm:$0xff]  }
  0xe3   : > { %v467_v51 = vpop.permute.xlu0 %466  ;;  %v835_v42 = vld [vmem:[#allocation2 + $0x88] sm:$0xff] }
  0xe4   : > { %v479_v52 = vsel %vm478_vm3, %v467_v51, %v469_v48  ;;  %v475_v53 = vpop.permute.xlu1 %474 }
  0xe5   : > { %945 = vmatpush1.bf16.msra.mxu0 %v479_v52 }
  0xe7   : > { %v477_v54 = vpop.permute.xlu0 %476 }
  0xe8   : > { %v482_v55 = vsel %vm478_vm3, %v475_v53, %v477_v54  ;;  %494 = vst.msk [vmem:[#allocation2 + $0xb8] sm:$0xff] %vm301_vm0, %v477_v54  ;;  %v473_v56 = vpop.permute.xlu1 %472  ;;  %v838_v48 = vld [vmem:[#allocation2 + $0xa0] sm:$0xff] }
  0xe9   : > { %v481_v57 = vsel %vm478_vm3, %v473_v56, %v475_v53  ;;  %946 = vmatprep.subr.bf16.mxu0 %v482_v55 }
  0xea   : > { %947 = vmatpush1.bf16.msra.mxu0 %v481_v57 }
  0xeb   : > { %v532_v58 = vpop.permute.xlu0 %531 }
  0xec   : > { %v534_v59 = vpop.permute.xlu1 %533 }
  0xed   : > { %v2927_v60 = vsel %vm541_vm4, %v532_v58, %v534_v59  ;;  %554 = vst.msk [vmem:[#allocation2 + $0xd0] sm:$0xff] %vm301_vm0, %v534_v59  ;;  %v2376_v59 = vld [vmem:[#allocation8 + $0x18] ss:$12 sps:$4 sm:$0xff]  }
  0xee   : > { %948 = vmatprep.subr.bf16.mxu0 %v2927_v60 }
  0xef   : > { %v530_v61 = vpop.permute.xlu0 %529  ;;  %v841_v57 = vld [vmem:[#allocation2 + $0xb8] sm:$0xff] }
  0xf0   : > { %v2932_v62 = vsel %vm541_vm4, %v530_v61, %v532_v58  ;;  %v538_v63 = vpop.permute.xlu1 %537 }
  0xf1   : > { %949 = vmatpush1.bf16.msra.mxu0 %v2932_v62 }
  0xf3   : > { %v540_v0 = vpop.permute.xlu0 %539 }
  0xf4   : > { %v2936_v2 = vsel %vm541_vm4, %v538_v63, %v540_v0  ;;  %557 = vst.msk [vmem:[#allocation2 + $0xe8] sm:$0xff] %vm301_vm0, %v540_v0  ;;  %v536_v3 = vpop.permute.xlu1 %535  ;;  %v2939_v4 = vld [vmem:[#allocation2 + $0xd0] sm:$0xff] }
  0xf5   : > { %v2942_v5 = vsel %vm541_vm4, %v536_v3, %v538_v63  ;;  %2164 = vmatprep.subr.bf16.mxu1 %v2939_v4  ;;  %950 = vmatprep.subr.bf16.mxu0 %v2936_v2 }
  0xf6   : > { %2165 = vmatpush3.bf16.msra.mxu1 %v820_v1  ;;  %951 = vmatpush1.bf16.msra.mxu0 %v2942_v5 }
  0xf7   : > { %v595_v6 = vpop.permute.xlu0 %594 }
  0xf8   : > { %v597_v7 = vpop.permute.xlu1 %596 }
  0xf9   : > { %v606_v8 = vsel %vm604_vm5, %v595_v6, %v597_v7  ;;  %617 = vst.msk [vmem:[#allocation2 + $0x100] sm:$0xff] %vm301_vm0, %v597_v7 }
  0xfa   : > { %952 = vmatprep.subr.bf16.mxu0 %v606_v8  ;;  %v2378_v8 = vld [vmem:[#allocation8 + $0x20] ss:$12 sps:$4 sm:$0xff]  }
  0xfb   : > { %v593_v10 = vpop.permute.xlu0 %592  ;;  %v2949_v11 = vld [vmem:[#allocation2 + $0xe8] sm:$0xff] }
  0xfc   : > { %v605_v12 = vsel %vm604_vm5, %v593_v10, %v595_v6  ;;  %v601_v13 = vpop.permute.xlu1 %600  ;;  %2166 = vmatprep.subr.bf16.mxu1 %v2949_v11  ;;  %v2377_v6 = vld [vmem:[#allocation8 + $0x8] ss:$12 sps:$4 sm:$0xff]  }
  0xfd   : > { %2167 = vmatpush3.bf16.msra.mxu1 %v823_v9  ;;  %953 = vmatpush1.bf16.msra.mxu0 %v605_v12 }
  0xff   : > { %v603_v14 = vpop.permute.xlu0 %602 }
 0x100   : > { %v608_v15 = vsel %vm604_vm5, %v601_v13, %v603_v14  ;;  %620 = vst.msk [vmem:[#allocation2 + $0x118] sm:$0xff] %vm301_vm0, %v603_v14  ;;  %v599_v16 = vpop.permute.xlu1 %598  ;;  %v850_v17 = vld [vmem:[#allocation2 + $0x100] sm:$0xff] }
 0x101   : > { %v607_v18 = vsel %vm604_vm5, %v599_v16, %v601_v13  ;;  %2168 = vmatprep.subr.bf16.mxu1 %v850_v17  ;;  %954 = vmatprep.subr.bf16.mxu0 %v608_v15 }
 0x102   : > { %2169 = vmatpush3.bf16.msra.mxu1 %v826_v19  ;;  %955 = vmatpush1.bf16.msra.mxu0 %v607_v18 }
 0x103   : > { %v658_v20 = vpop.permute.xlu0 %657 }
 0x104   : > { %v660_v21 = vpop.permute.xlu1 %659 }
 0x105   : > { %v669_v22 = vsel %vm667_vm6, %v658_v20, %v660_v21  ;;  %680 = vst.msk [vmem:[#allocation2 + $0x130] sm:$0xff] %vm301_vm0, %v660_v21 }
 0x106   : > { %956 = vmatprep.subr.bf16.mxu0 %v669_v22 }
 0x107   : > { %v656_v24 = vpop.permute.xlu0 %655  ;;  %v853_v25 = vld [vmem:[#allocation2 + $0x118] sm:$0xff] }
 0x108   : > { %v668_v26 = vsel %vm667_vm6, %v656_v24, %v658_v20  ;;  %v664_v27 = vpop.permute.xlu1 %663  ;;  %2170 = vmatprep.subr.bf16.mxu1 %v853_v25 }
 0x109   : > { %2171 = vmatpush3.bf16.msra.mxu1 %v829_v28  ;;  %957 = vmatpush1.bf16.msra.mxu0 %v668_v26 }
 0x10b   : > { %v666_v29 = vpop.permute.xlu0 %665 }
 0x10c   : > { %v671_v30 = vsel %vm667_vm6, %v664_v27, %v666_v29  ;;  %683 = vst.msk [vmem:[#allocation2 + $0x148] sm:$0xff] %vm301_vm0, %v666_v29  ;;  %v662_v31 = vpop.permute.xlu1 %661  ;;  %v856_v32 = vld [vmem:[#allocation2 + $0x130] sm:$0xff] }
 0x10d   : > { %v670_v33 = vsel %vm667_vm6, %v662_v31, %v664_v27  ;;  %2172 = vmatprep.subr.bf16.mxu1 %v856_v32  ;;  %958 = vmatprep.subr.bf16.mxu0 %v671_v30 }
 0x10e   : > { %2173 = vmatpush3.bf16.msra.mxu1 %v832_v34  ;;  %959 = vmatpush1.bf16.msra.mxu0 %v670_v33 }
 0x10f   : > { %v721_v35 = vpop.permute.xlu0 %720 }
 0x110   : > { %v723_v36 = vpop.permute.xlu1 %722 }
 0x111   : > { %v732_v37 = vsel %vm730_vm7, %v721_v35, %v723_v36  ;;  %743 = vst.msk [vmem:[#allocation2 + $0x160] sm:$0xff] %vm301_vm0, %v723_v36 }
 0x112   : > { %960 = vmatprep.subr.bf16.mxu0 %v732_v37 }
 0x113   : > { %v719_v38 = vpop.permute.xlu0 %718  ;;  %v859_v39 = vld [vmem:[#allocation2 + $0x148] sm:$0xff] }
 0x114   : > { %v731_v40 = vsel %vm730_vm7, %v719_v38, %v721_v35  ;;  %v727_v41 = vpop.permute.xlu1 %726  ;;  %2174 = vmatprep.subr.bf16.mxu1 %v859_v39 }
 0x115   : > { %2175 = vmatpush3.bf16.msra.mxu1 %v835_v42  ;;  %961 = vmatpush1.bf16.msra.mxu0 %v731_v40 }
 0x117   : > { %v729_v43 = vpop.permute.xlu0 %728 }
 0x118   : > { %v734_v44 = vsel %vm730_vm7, %v727_v41, %v729_v43  ;;  %746 = vst.msk [vmem:[#allocation2 + $0x178] sm:$0xff] %vm301_vm0, %v729_v43  ;;  %v725_v45 = vpop.permute.xlu1 %724  ;;  %v862_v46 = vld [vmem:[#allocation2 + $0x160] sm:$0xff] }
 0x119   : > { %v733_v47 = vsel %vm730_vm7, %v725_v45, %v727_v41  ;;  %2176 = vmatprep.subr.bf16.mxu1 %v862_v46  ;;  %962 = vmatprep.subr.bf16.mxu0 %v734_v44 }
 0x11a   : > { %2177 = vmatpush3.bf16.msra.mxu1 %v838_v48  ;;  %963 = vmatpush1.bf16.msra.mxu0 %v733_v47 }
 0x11b   : > { %v784_v51 = vpop.permute.xlu0 %783 }
 0x11c   : > { %v786_v52 = vpop.permute.xlu1 %785 }
 0x11d   : > { %v795_v53 = vsel %vm793_vm8, %v784_v51, %v786_v52  ;;  %806 = vst.msk [vmem:[#allocation2 + $0x190] sm:$0xff] %vm301_vm0, %v786_v52  ;;  %965 = vmatmul.mubr.bf16.vlgmr.msra.gmra.mrb[0].mxu0 %v2371_v49 }
 0x11e   : > { %985 = vmatprep.subr.bf16.mxu0 %v795_v53  ;;  %974 = vmatprep.mubr.bf16.mxu0 %v2374_v50 }
 0x11f   : > { %v782_v54 = vpop.permute.xlu0 %781  ;;  %v865_v55 = vld [vmem:[#allocation2 + $0x178] sm:$0xff] }
 0x120   : > { %v794_v56 = vsel %vm793_vm8, %v782_v54, %v784_v51  ;;  %2178 = vmatprep.subr.bf16.mxu1 %v865_v55  ;;  %v790_v58 = vpop.permute.xlu1 %789 }
 0x121   : > { %2179 = vmatpush3.bf16.msra.mxu1 %v841_v57  ;;  %986 = vmatpush1.bf16.msra.mxu0 %v794_v56 }
 0x123   : > { %v792_v61 = vpop.permute.xlu0 %791 }
 0x124   : > { %v797_v63 = vsel %vm793_vm8, %v790_v58, %v792_v61  ;;  %809 = vst.msk [vmem:[#allocation2 + $0x1a8] sm:$0xff] %vm301_vm0, %v792_v61  ;;  %1071 = vmatmul.mubr.bf16.vlgmr.msra.gmra.mrb[0].mxu1 %v2371_v49  ;;  %v868_v0 = vld [vmem:[#allocation2 + $0x190] sm:$0xff]  ;;  %v788_v1 = vpop.permute.xlu1 %787 }
 0x125   : > { %2221 = vmatprep.subr.bf16.mxu1 %v868_v0  ;;  %v796_v3 = vsel %vm793_vm8, %v788_v1, %v790_v58  ;;  %1078 = vmatprep.mubr.bf16.mxu1 %v2374_v50 }
 0x126   : > { %2222 = vmatpush3.bf16.msra.mxu1 %v868_v0  ;;  %975 = vmatmul.mubr.bf16.gmra.mrb[4].mxu0 %v2376_v59 }
 0x127   : > { %987 = vmatprep.subr.bf16.mxu0 %v797_v63  ;;  %1017 = vmatprep.mubr.bf16.mxu0 %v2572_v23 }
 0x128   : > { %988 = vmatpush1.bf16.msra.mxu0 %v796_v3 }
 0x12b   : > { %v871_v7 = vld [vmem:[#allocation2 + $0x1a8] sm:$0xff] }
 0x12c   : > { %1079 = vmatmul.mubr.bf16.gmra.mrb[4].mxu1 %v2376_v59  ;;  %2223 = vmatprep.subr.bf16.mxu1 %v871_v7 }
 0x12d   : > { %2224 = vmatpush3.bf16.msra.mxu1 %v871_v7  ;;  %2225 = vmatprep.mubr.msk.bf16.mxu1 %vm301_vm0, %v2377_v6 }
 0x12e   : > { %2137 = vmatmul.mubr.msk.bf16.vlgmr.msra.gmra.mrb[0].mxu0 %vm301_vm0, %v2377_v6 }
 0x12f   : > { %1027 = vmatprep.mubr.bf16.mxu0 %v2572_v23 }
 0x134   : > { %2226 = vmatmul.mubr.msk.bf16.vlgmr.msra.gmra.mrb[8].mxu1 %vm301_vm0, %v2378_v8  ;;  %v879_v18 = vpop.permute.xlu0 %878 }
 0x135   : > { %v884_v16 = vpop.permute.xlu1 %883 }
 0x136   : > { %2138 = vmatmul.mubr.msk.bf16.gmra.mrb[4].mxu0 %vm301_vm0, %v2378_v8 }
 0x138   : > { %v894_v34 = vpop.permute.xlu0 %893 }
 0x139   : > { %v889_v27 = vpop.permute.xlu1 %888 }
 0x1f7   : > { %v2180_v9 = vpop.f32.mrb[0].mxu1 }
 0x1f8   : > { %v2181_v10 = vpop.f32.mrb[1].mxu1 }
 0x1f9   : > { %v2182_v12 = vadd.f32 %v2181_v10, %v2180_v9  ;;  %v2183_v13 = vpop.f32.mrb[2].mxu1 }
 0x1fa   : > { %v2184_v14 = vpop.f32.mrb[3].mxu1 }
 0x1fb   : > { %v2185_v15 = vadd.f32 %v2184_v14, %v2183_v13  ;;  %v1073_v40 = vadd.f32 %v2182_v12, %v879_v18 }
 0x1fd   : > { %v1076_v47 = vadd.f32 %v2185_v15, %v884_v16 }
 0x1ff   : > { %v2186_v17 = vpop.f32.mrb[4].mxu1 }
 0x200   : > { %v2187_v19 = vpop.f32.mrb[5].mxu1 }
 0x201   : > { %v2188_v20 = vadd.f32 %v2187_v19, %v2186_v17  ;;  %v2189_v21 = vpop.f32.mrb[6].mxu1  ;;  %v1019_v22 = vpop.f32.mrb[0].mxu0 }
 0x202   : > { %v2190_v24 = vpop.f32.mrb[7].mxu1  ;;  %v2237_v25 = vadd.f32 %v1019_v22, %v879_v18  ;;  %v1021_v26 = vpop.f32.mrb[1].mxu0 }
 0x203   : > { %v2191_v28 = vadd.f32 %v2190_v24, %v2189_v21  ;;  %v2238_v29 = vadd.f32 %v1021_v26, %v879_v18  ;;  %v1023_v30 = vpop.f32.mrb[2].mxu0  ;;  %v1081_v37 = vadd.f32 %v2188_v20, %v889_v27 }
 0x204   : > { %v2141_v31 = vmul.f32 -1.442695, %v2237_v25  ;;  %v2239_v32 = vadd.f32 %v1023_v30, %v884_v16  ;;  %v1025_v33 = vpop.f32.mrb[3].mxu0 }
 0x205   : > { %v2142_v35 = vmul.f32 -1.442695, %v2238_v29  ;;  %v2240_v36 = vadd.f32 %v1025_v33, %v884_v16  ;;  %v1084_v44 = vadd.f32 %v2191_v28, %v894_v34 }
 0x206   : > { %2382 = vpow2.f32 %v2141_v31  ;;  %v2144_v38 = vmul.f32 -1.442695, %v2239_v32  ;;  %v1215_v31 = vunpack.c.l.bf16 %v2927_v60  ;;  %v1214_v32 = vunpack.c.l.bf16 %v2932_v62 }
 0x207   : > { %v2227_v39 = vpop.f32.mrb[8].mxu1  ;;  %2384 = vpow2.f32 %v2142_v35  ;;  %v2145_v41 = vmul.f32 -1.442695, %v2240_v36  ;;  %v1217_v36 = vunpack.c.h.bf16 %v2932_v62 }
 0x208   : > { %v1130_v42 = vadd.f32 %v2227_v39, %v1081_v37  ;;  %v1121_v43 = vpop.f32.mrb[9].mxu1  ;;  %2386 = vpow2.f32 %v2144_v38  ;;  %v1218_v39 = vunpack.c.h.bf16 %v2927_v60  ;;  %v1219_v60 = vunpack.c.h.bf16 %v2939_v4 }
 0x209   : > { %v1122_v45 = vadd.f32 %v1121_v43, %v1073_v40  ;;  %v2228_v46 = vpop.f32.mrb[10].mxu1  ;;  %2388 = vpow2.f32 %v2145_v41  ;;  %v1029_v48 = vpop.f32.mrb[4].mxu0 }
 0x20a   : > { %v2149_v49 = vmul.f32 -1.442695, %v1130_v42  ;;  %v1133_v50 = vadd.f32 %v2228_v46, %v1084_v44  ;;  %v1124_v51 = vpop.f32.mrb[11].mxu1  ;;  %v2241_v52 = vadd.f32 %v1029_v48, %v889_v27  ;;  %v1031_v53 = vpop.f32.mrb[5].mxu0 }
 0x20b   : > { %v2143_v54 = vmul.f32 -1.442695, %v1122_v45  ;;  %v1125_v55 = vadd.f32 %v1124_v51, %v1076_v47  ;;  %v2242_v56 = vadd.f32 %v1031_v53, %v889_v27  ;;  %v1033_v57 = vpop.f32.mrb[6].mxu0 }
 0x20c   : > { %2390 = vpow2.f32 %v2149_v49  ;;  %v2152_v58 = vmul.f32 -1.442695, %v1133_v50  ;;  %v2147_v59 = vmul.f32 -1.442695, %v2241_v52  ;;  %v2243_v61 = vadd.f32 %v1033_v57, %v894_v34  ;;  %v1035_v63 = vpop.f32.mrb[7].mxu0 }
 0x20d   : > { %2392 = vpow2.f32 %v2143_v54  ;;  %v2146_v0 = vmul.f32 -1.442695, %v1125_v55  ;;  %v2148_v1 = vmul.f32 -1.442695, %v2242_v56  ;;  %v2244_v6 = vadd.f32 %v1035_v63, %v894_v34 }
 0x20e   : > { %2394 = vpow2.f32 %v2152_v58  ;;  %v2150_v3 = vmul.f32 -1.442695, %v2243_v61  ;;  %v1222_v49 = vunpack.c.l.bf16 %v2949_v11  ;;  %v1225_v50 = vunpack.c.h.bf16 %v2949_v11 }
 0x20f   : > { %2396 = vpow2.f32 %v2146_v0  ;;  %v2151_v15 = vmul.f32 -1.442695, %v2244_v6  ;;  %v1216_v52 = vunpack.c.l.bf16 %v2939_v4  ;;  %v1220_v54 = vunpack.c.l.bf16 %v2942_v5 }
 0x210   : > { %v2383_v7 = vpop.eup %2382  ;;  %2398 = vpow2.f32 %v2147_v59  ;;  %v1221_v61 = vunpack.c.l.bf16 %v2936_v2  ;;  %v1223_v11 = vunpack.c.h.bf16 %v2942_v5 }
 0x211   : > { %v2385_v8 = vpop.eup %2384  ;;  %v1172_v9 = vadd.f32 1.0, %v2383_v7  ;;  %2400 = vpow2.f32 %v2148_v1 }
 0x212   : > { %v2387_v10 = vpop.eup %2386  ;;  %v1173_v12 = vadd.f32 1.0, %v2385_v8  ;;  %2402 = vpow2.f32 %v2150_v3 }
 0x213   : > { %v2389_v13 = vpop.eup %2388  ;;  %2404 = vrcp.f32 %v1172_v9  ;;  %v1175_v14 = vadd.f32 1.0, %v2387_v10  ;;  %v1224_v9 = vunpack.c.h.bf16 %v2936_v2 }
 0x214   : > { %2406 = vrcp.f32 %v1173_v12  ;;  %v1176_v16 = vadd.f32 1.0, %v2389_v13 }
 0x215   : > { %2408 = vrcp.f32 %v1175_v14 }
 0x216   : > { %v2391_v17 = vpop.eup %2390  ;;  %2410 = vrcp.f32 %v1176_v16 }
 0x217   : > { %v2393_v18 = vpop.eup %2392  ;;  %v1180_v19 = vadd.f32 1.0, %v2391_v17  ;;  %2412 = vpow2.f32 %v2151_v15 }
 0x218   : > { %v2395_v20 = vpop.eup %2394  ;;  %v1174_v21 = vadd.f32 1.0, %v2393_v18 }
 0x219   : > { %v2397_v22 = vpop.eup %2396  ;;  %2414 = vrcp.f32 %v1180_v19  ;;  %v1183_v24 = vadd.f32 1.0, %v2395_v20 }
 0x21a   : > { %v2399_v25 = vpop.eup %2398  ;;  %2416 = vrcp.f32 %v1174_v21  ;;  %v1177_v26 = vadd.f32 1.0, %v2397_v22 }
 0x21b   : > { %v2401_v27 = vpop.eup %2400  ;;  %2418 = vrcp.f32 %v1183_v24  ;;  %v1178_v28 = vadd.f32 1.0, %v2399_v25 }
 0x21c   : > { %v2403_v29 = vpop.eup %2402  ;;  %2420 = vrcp.f32 %v1177_v26  ;;  %v1179_v30 = vadd.f32 1.0, %v2401_v27  ;;  %v3058_v27 = vld [vmem:[%s3222_s3] sm:$0xff] }
 0x21d   : > { %v2405_v33 = vpop.eup %2404  ;;  %2422 = vrcp.f32 %v1178_v28  ;;  %v1181_v34 = vadd.f32 1.0, %v2403_v29  ;;  %v2154_v28 = vcombine.high %v3058_v27, %v3058_v27  ;;  %v1675_v29 = vld [vmem:[%s3223_s4] sm:$0xff] }
 0x21e   : > { %v2407_v35 = vpop.eup %2406  ;;  %2424 = vrcp.f32 %v1179_v30  ;;  %v1226_v37 = vmul.f32 %v2405_v33, %v1214_v32 }
 0x21f   : > { %v2409_v38 = vpop.eup %2408  ;;  %2426 = vrcp.f32 %v1181_v34  ;;  %v1227_v40 = vmul.f32 %v2407_v35, %v1215_v31  ;;  %1808 = vmatprep.mubr.bf16.mxu0 %v2154_v28  ;;  %1726 = vmatprep.mubr.bf16.mxu1 %v2154_v28 }
 0x220   : > { %v2411_v41 = vpop.eup %2410  ;;  %v1229_v42 = vmul.f32 %v2409_v38, %v1217_v36 }
 0x221   : > { %v2413_v43 = vpop.eup %2412  ;;  %v1230_v62 = vmul.f32 %v2411_v41, %v1218_v39 }
 0x222   : > { %v1182_v44 = vadd.f32 1.0, %v2413_v43  ;;  %v1238_v45 = vpack.c.bf16 %v1229_v42, %v1226_v37 }
 0x223   : > { %v2415_v46 = vpop.eup %2414  ;;  %v1239_v47 = vpack.c.bf16 %v1230_v62, %v1227_v40 }
 0x224   : > { %v2417_v48 = vpop.eup %2416  ;;  %2428 = vrcp.f32 %v1182_v44  ;;  %v1234_v55 = vmul.f32 %v2415_v46, %v1222_v49 }
 0x225   : > { %v2419_v51 = vpop.eup %2418  ;;  %1258 = vrot.lane.b32.xlu0 %v1239_v47, %s2573_s15  ;;  %v1228_v58 = vmul.f32 %v2417_v48, %v1216_v52 }
 0x226   : > { %v2421_v53 = vpop.eup %2420  ;;  %v1237_v56 = vmul.f32 %v2419_v51, %v1225_v50 }
 0x227   : > { %v2423_v57 = vpop.eup %2422  ;;  %v1231_v59 = vmul.f32 %v2421_v53, %v1219_v60 }
 0x228   : > { %v2425_v63 = vpop.eup %2424  ;;  %v1232_v0 = vmul.f32 %v2423_v57, %v1220_v54  ;;  %v1243_v1 = vpack.c.bf16 %v1237_v56, %v1234_v55 }
 0x229   : > { %v2427_v3 = vpop.eup %2426  ;;  %v1240_v6 = vpack.c.bf16 %v1231_v59, %v1228_v58  ;;  %v1233_v4 = vmul.f32 %v2425_v63, %v1221_v61 }
 0x22a   : > { %v1235_v7 = vmul.f32 %v2427_v3, %v1223_v11 }
 0x22b   : > { %1260 = vrot.lane.b32.xlu1 %v1240_v6, %s2573_s15 }
 0x22c   : > { %v1241_v8 = vpack.c.bf16 %v1235_v7, %v1232_v0 }
 0x22e   : > { %v2429_v10 = vpop.eup %2428  ;;  %1262 = vrot.lane.b32.xlu0 %v1241_v8, %s2573_s15 }
 0x22f   : > { %1256 = vrot.lane.b32.xlu1 %v1238_v45, %s2573_s15  ;;  %v1236_v12 = vmul.f32 %v2429_v10, %v1224_v9 }
 0x231   : > { %v1242_v13 = vpack.c.bf16 %v1236_v12, %v1233_v4 }
 0x232   : > { %1266 = vrot.lane.b32.xlu0 %v1243_v1, %s2573_s15 }
 0x233   : > { %1264 = vrot.lane.b32.xlu1 %v1242_v13, %s2573_s15  ;;  %s2578_s15 = smov 120  }
 0x297   : > { %v1259_v14 = vpop.permute.xlu0 %1258 }
 0x29d   : > { %v1261_v5 = vpop.permute.xlu1 %1260 }
 0x29e   : > { %v1270_v15 = vsel %vm1244_vm9, %v1259_v14, %v1261_v5 }
 0x29f   : > { %1283 = vst.msk [vmem:[#allocation3 + $0x10] sm:$0xff] %vm1282_vm11, %v1270_v15 }
 0x2a0   : > { %v1263_v16 = vpop.permute.xlu0 %1262 }
 0x2a1   : > { %v1257_v17 = vpop.permute.xlu1 %1256  ;;  %1284 = vst.msk [vmem:[#allocation3 + $0x18] sm:$0xff] %vm1279_vm12, %v1263_v16 }
 0x2a2   : > { %v3001_v2 = vsel %vm1244_vm9, %v1257_v17, %v1259_v14  ;;  %1280 = vst.msk [vmem:[#allocation3] sm:$0xff] %vm1279_vm12, %v1257_v17 }
 0x2a3   : > { %1694 = vmatprep.subr.bf16.mxu1 %v3001_v2 }
 0x2a4   : > { %v1267_v19 = vpop.permute.xlu0 %1266 }
 0x2a5   : > { %v1265_v18 = vpop.permute.xlu1 %1264 }
 0x2a6   : > { %v1289_v20 = vld [vmem:[#allocation3 + $0x10] sm:$0xff]  ;;  %v1271_v21 = vsel %vm1244_vm9, %v1263_v16, %v1265_v18  ;;  %v1272_v22 = vsel %vm1244_vm9, %v1265_v18, %v1267_v19 }
 0x2a7   : > { %1295 = vst.msk [vmem:[#allocation2 + $0x10] sm:$0xff] %vm301_vm0, %v1289_v20  ;;  %1315 = vrot.lane.b32.xlu0 %v1289_v20, %s2564_s26 }
 0x2a8   : > { %1286 = vst.msk [vmem:[#allocation3 + $0x28] sm:$0xff] %vm1282_vm11, %v1272_v22  ;;  %v1290_v24 = vld [vmem:[#allocation3 + $0x18] sm:$0xff] }
 0x2a9   : > { %v1287_v25 = vld [vmem:[#allocation3] sm:$0xff] }
 0x2aa   : > { %1311 = vrot.lane.b32.xlu1 %v1287_v25, %s2564_s26  ;;  %1695 = vmatpush1.bf16.msra.mxu1 %v1287_v25 }
 0x2ab   : > { %1355 = vrot.lane.b32.xlu0 %v1289_v20, %s2565_s24  ;;  %1696 = vmatprep.subr.bf16.mxu1 %v1271_v21 }
 0x2ae   : > { %1351 = vrot.lane.b32.xlu1 %v1287_v25, %s2565_s24  ;;  %1697 = vmatpush1.bf16.msra.mxu1 %v1290_v24  ;;  %v1623_v62 = vld [vmem:[#allocation2 + $0x10] sm:$0xff] }
 0x2af   : > { %v1292_v26 = vld [vmem:[#allocation3 + $0x28] sm:$0xff]  ;;  %1395 = vrot.lane.b32.xlu0 %v1289_v20, %s2566_s17 }
 0x2b0   : > { %1298 = vst.msk [vmem:[#allocation2 + $0x28] sm:$0xff] %vm301_vm0, %v1292_v26 }
 0x2b2   : > { %1391 = vrot.lane.b32.xlu1 %v1287_v25, %s2566_s17 }
 0x2b3   : > { %1435 = vrot.lane.b32.xlu0 %v1289_v20, %s2567_s12 }
 0x2b6   : > { %1431 = vrot.lane.b32.xlu1 %v1287_v25, %s2567_s12 }
 0x2b7   : > { %1317 = vrot.lane.b32.xlu0 %v1290_v24, %s2564_s26  ;;  %v1626_v28 = vld [vmem:[#allocation2 + $0x28] sm:$0xff] }
 0x2ba   : > { %1313 = vrot.lane.b32.xlu1 %v3001_v2, %s2564_s26 }
 0x2bb   : > { %1357 = vrot.lane.b32.xlu0 %v1290_v24, %s2565_s24 }
 0x2be   : > { %1353 = vrot.lane.b32.xlu1 %v3001_v2, %s2565_s24 }
 0x2bf   : > { %1397 = vrot.lane.b32.xlu0 %v1290_v24, %s2566_s17 }
 0x2c2   : > { %1393 = vrot.lane.b32.xlu1 %v3001_v2, %s2566_s17 }
 0x2c3   : > { %1319 = vrot.lane.b32.xlu0 %v1271_v21, %s2564_s26 }
 0x2c6   : > { %1433 = vrot.lane.b32.xlu1 %v3001_v2, %s2567_s12 }
 0x2c7   : > { %1437 = vrot.lane.b32.xlu0 %v1290_v24, %s2567_s12 }
 0x2ca   : > { %1321 = vrot.lane.b32.xlu1 %v1292_v26, %s2564_s26  ;;  %s3243_s26 = smov 91  }
 0x2cb   : > { %1359 = vrot.lane.b32.xlu0 %v1271_v21, %s2565_s24 }
 0x2ce   : > { %1473 = vrot.lane.b32.xlu1 %v3001_v2, %s2568_s6 }
 0x2cf   : > { %1475 = vrot.lane.b32.xlu0 %v1289_v20, %s2568_s6 }
 0x2d2   : > { %1361 = vrot.lane.b32.xlu1 %v1292_v26, %s2565_s24 }
 0x2d3   : > { %1399 = vrot.lane.b32.xlu0 %v1271_v21, %s2566_s17 }
 0x2d6   : > { %1471 = vrot.lane.b32.xlu1 %v1287_v25, %s2568_s6 }
 0x2d7   : > { %1477 = vrot.lane.b32.xlu0 %v1290_v24, %s2568_s6 }
 0x2da   : > { %1401 = vrot.lane.b32.xlu1 %v1292_v26, %s2566_s17 }
 0x2db   : > { %1439 = vrot.lane.b32.xlu0 %v1271_v21, %s2567_s12 }
 0x2de   : > { %1513 = vrot.lane.b32.xlu1 %v3001_v2, %s2569_s14 }
 0x2df   : > { %1515 = vrot.lane.b32.xlu0 %v1289_v20, %s2569_s14 }
 0x2e2   : > { %1441 = vrot.lane.b32.xlu1 %v1292_v26, %s2567_s12  ;;  %s2581_s12 = smov 114  }
 0x2e3   : > { %1479 = vrot.lane.b32.xlu0 %v1271_v21, %s2568_s6 }
 0x2e6   : > { %1511 = vrot.lane.b32.xlu1 %v1287_v25, %s2569_s14 }
 0x2e7   : > { %1517 = vrot.lane.b32.xlu0 %v1290_v24, %s2569_s14 }
 0x2ea   : > { %1481 = vrot.lane.b32.xlu1 %v1292_v26, %s2568_s6 }
 0x2eb   : > { %1519 = vrot.lane.b32.xlu0 %v1271_v21, %s2569_s14 }
 0x2ee   : > { %1553 = vrot.lane.b32.xlu1 %v3001_v2, %s3243_s26 }
 0x2ef   : > { %1555 = vrot.lane.b32.xlu0 %v1289_v20, %s3243_s26 }
 0x2f2   : > { %1521 = vrot.lane.b32.xlu1 %v1292_v26, %s2569_s14  ;;  %s2583_s14 = smov 112  }
 0x2f3   : > { %1559 = vrot.lane.b32.xlu0 %v1271_v21, %s3243_s26 }
 0x2f6   : > { %1551 = vrot.lane.b32.xlu1 %v1287_v25, %s3243_s26 }
 0x2f7   : > { %1557 = vrot.lane.b32.xlu0 %v1290_v24, %s3243_s26 }
 0x2fa   : > { %1561 = vrot.lane.b32.xlu1 %v1292_v26, %s3243_s26  ;;  %s2580_s26 = smov 118  }
 0x2fb   : > { %1595 = vrot.lane.b32.xlu0 %v1289_v20, %s2571_s29 }
 0x2fe   : > { %1593 = vrot.lane.b32.xlu1 %v3001_v2, %s2571_s29 }
 0x2ff   : > { %1599 = vrot.lane.b32.xlu0 %v1271_v21, %s2571_s29 }
 0x302   : > { %1591 = vrot.lane.b32.xlu1 %v1287_v25, %s2571_s29 }
 0x303   : > { %1597 = vrot.lane.b32.xlu0 %v1290_v24, %s2571_s29 }
 0x306   : > { %1601 = vrot.lane.b32.xlu1 %v1292_v26, %s2571_s29  ;;  %s2585_s29 = smov 104  }
 0x30a   : > { %1678 = vperm.xlu1 %2346, %v1675_v29  }
 0x319   : > { %v1316_v30 = vpop.permute.xlu0 %1315 }
 0x31a   : > { %1335 = vst.msk [vmem:[#allocation2 + $0x40] sm:$0xff] %vm301_vm0, %v1316_v30 }
 0x31c   : > { %v1312_v31 = vpop.permute.xlu1 %1311 }
 0x31d   : > { %v1356_v32 = vpop.permute.xlu0 %1355 }
 0x31e   : > { %1375 = vst.msk [vmem:[#allocation2 + $0x70] sm:$0xff] %vm301_vm0, %v1356_v32 }
 0x320   : > { %v1352_v33 = vpop.permute.xlu1 %1351 }
 0x321   : > { %v1396_v34 = vpop.permute.xlu0 %1395 }
 0x322   : > { %1415 = vst.msk [vmem:[#allocation2 + $0xa0] sm:$0xff] %vm301_vm0, %v1396_v34 }
 0x324   : > { %v1392_v35 = vpop.permute.xlu1 %1391 }
 0x325   : > { %v1436_v36 = vpop.permute.xlu0 %1435 }
 0x326   : > { %1455 = vst.msk [vmem:[#allocation2 + $0xd0] sm:$0xff] %vm301_vm0, %v1436_v36 }
 0x328   : > { %v1432_v37 = vpop.permute.xlu1 %1431 }
 0x329   : > { %v1318_v38 = vpop.permute.xlu0 %1317 }
 0x32c   : > { %v1314_v39 = vpop.permute.xlu1 %1313 }
 0x32d   : > { %v1323_v40 = vsel %vm352_vm1, %v1312_v31, %v1314_v39  ;;  %v1324_v41 = vsel %vm352_vm1, %v1314_v39, %v1316_v30  ;;  %v1358_v42 = vpop.permute.xlu0 %1357  ;;  %v1647_v43 = vld [vmem:[#allocation2 + $0xd0] sm:$0xff] }
 0x32e   : > { %2196 = vmatprep.subr.bf16.mxu0 %v1647_v43  ;;  %1698 = vmatprep.subr.bf16.mxu1 %v1324_v41 }
 0x32f   : > { %2197 = vmatpush3.bf16.msra.mxu0 %v1623_v62  ;;  %1699 = vmatpush1.bf16.msra.mxu1 %v1323_v40  ;;  %v1635_v62 = vld [vmem:[#allocation2 + $0x70] sm:$0xff] }
 0x330   : > { %v1354_v44 = vpop.permute.xlu1 %1353 }
 0x331   : > { %v1363_v45 = vsel %vm415_vm2, %v1352_v33, %v1354_v44  ;;  %v1364_v46 = vsel %vm415_vm2, %v1354_v44, %v1356_v32  ;;  %v1398_v47 = vpop.permute.xlu0 %1397  ;;  %v1629_v33 = vld [vmem:[#allocation2 + $0x40] sm:$0xff] }
 0x334   : > { %v1394_v48 = vpop.permute.xlu1 %1393 }
 0x335   : > { %v1403_v49 = vsel %vm478_vm3, %v1392_v35, %v1394_v48  ;;  %v1404_v50 = vsel %vm478_vm3, %v1394_v48, %v1396_v34  ;;  %v1320_v51 = vpop.permute.xlu0 %1319 }
 0x336   : > { %v1325_v52 = vsel %vm352_vm1, %v1318_v38, %v1320_v51 }
 0x338   : > { %v1434_v60 = vpop.permute.xlu1 %1433 }
 0x339   : > { %v1443_v53 = vsel %vm541_vm4, %v1432_v37, %v1434_v60  ;;  %v1444_v54 = vsel %vm541_vm4, %v1434_v60, %v1436_v36  ;;  %v1438_v55 = vpop.permute.xlu0 %1437 }
 0x33c   : > { %v1322_v56 = vpop.permute.xlu1 %1321 }
 0x33d   : > { %v1326_v57 = vsel %vm352_vm1, %v1320_v51, %v1322_v56  ;;  %1338 = vst.msk [vmem:[#allocation2 + $0x58] sm:$0xff] %vm301_vm0, %v1322_v56  ;;  %v1360_v58 = vpop.permute.xlu0 %1359  ;;  %v2153_v51 = vcombine.low %v3058_v27, %v3058_v27  ;;  %vm1884_vm1 = vcmask 523648  }
 0x33e   : > { %v1365_v59 = vsel %vm415_vm2, %v1358_v42, %v1360_v58  ;;  %1700 = vmatprep.subr.bf16.mxu1 %v1326_v57 }
 0x33f   : > { %1701 = vmatpush1.bf16.msra.mxu1 %v1325_v52 }
 0x340   : > { %v1474_v61 = vpop.permute.xlu1 %1473  ;;  %1702 = vmatprep.subr.bf16.mxu1 %v1364_v46 }
 0x341   : > { %v1476_v63 = vpop.permute.xlu0 %1475 }
 0x342   : > { %v1484_v11 = vsel %vm604_vm5, %v1474_v61, %v1476_v63  ;;  %1495 = vst.msk [vmem:[#allocation2 + $0x100] sm:$0xff] %vm301_vm0, %v1476_v63 }
 0x343   : > { %1703 = vmatpush1.bf16.msra.mxu1 %v1363_v45 }
 0x344   : > { %v1362_v0 = vpop.permute.xlu1 %1361  ;;  %v1632_v39 = vld [vmem:[#allocation2 + $0x58] sm:$0xff] }
 0x345   : > { %v1366_v1 = vsel %vm415_vm2, %v1360_v58, %v1362_v0  ;;  %1378 = vst.msk [vmem:[#allocation2 + $0x88] sm:$0xff] %vm301_vm0, %v1362_v0  ;;  %v1400_v3 = vpop.permute.xlu0 %1399  ;;  %v2381_v0 = vld [vmem:[%s3222_s3 + $0x8] ss:$0 sps:$4 sm:$0xff]   ;;  %vm1891_vm2 = vcmask 654848  }
 0x346   : > { %v1405_v6 = vsel %vm478_vm3, %v1398_v47, %v1400_v3  ;;  %1704 = vmatprep.subr.bf16.mxu1 %v1366_v1 }
 0x347   : > { %1705 = vmatpush1.bf16.msra.mxu1 %v1365_v59 }
 0x348   : > { %v1472_v4 = vpop.permute.xlu1 %1471  ;;  %1706 = vmatprep.subr.bf16.mxu1 %v1404_v50 }
 0x349   : > { %v1483_v7 = vsel %vm604_vm5, %v1472_v4, %v1474_v61  ;;  %v1478_v8 = vpop.permute.xlu0 %1477  ;;  %v1653_v30 = vld [vmem:[#allocation2 + $0x100] sm:$0xff]  ;;  %v2574_v61 = vmov 0.0  }
 0x34b   : > { %1707 = vmatpush1.bf16.msra.mxu1 %v1403_v49 }
 0x34c   : > { %v1402_v9 = vpop.permute.xlu1 %1401  ;;  %v1638_v49 = vld [vmem:[#allocation2 + $0x88] sm:$0xff] }
 0x34d   : > { %v1406_v10 = vsel %vm478_vm3, %v1400_v3, %v1402_v9  ;;  %1418 = vst.msk [vmem:[#allocation2 + $0xb8] sm:$0xff] %vm301_vm0, %v1402_v9  ;;  %v1440_v12 = vpop.permute.xlu0 %1439  ;;  %vm1898_vm3 = vcmask 786048  }
 0x34e   : > { %v1445_v13 = vsel %vm541_vm4, %v1438_v55, %v1440_v12  ;;  %1708 = vmatprep.subr.bf16.mxu1 %v1406_v10 }
 0x34f   : > { %1709 = vmatpush1.bf16.msra.mxu1 %v1405_v6 }
 0x350   : > { %v1514_v14 = vpop.permute.xlu1 %1513  ;;  %1710 = vmatprep.subr.bf16.mxu1 %v1444_v54  ;;  %v1641_v54 = vld [vmem:[#allocation2 + $0xa0] sm:$0xff] }
 0x351   : > { %v1516_v5 = vpop.permute.xlu0 %1515 }
 0x352   : > { %v1524_v15 = vsel %vm667_vm6, %v1514_v14, %v1516_v5  ;;  %1535 = vst.msk [vmem:[#allocation2 + $0x130] sm:$0xff] %vm301_vm0, %v1516_v5 }
 0x353   : > { %1711 = vmatpush1.bf16.msra.mxu1 %v1443_v53 }
 0x354   : > { %v1442_v16 = vpop.permute.xlu1 %1441  ;;  %v1644_v59 = vld [vmem:[#allocation2 + $0xb8] sm:$0xff] }
 0x355   : > { %v1446_v17 = vsel %vm541_vm4, %v1440_v12, %v1442_v16  ;;  %1458 = vst.msk [vmem:[#allocation2 + $0xe8] sm:$0xff] %vm301_vm0, %v1442_v16  ;;  %v1480_v2 = vpop.permute.xlu0 %1479  ;;  %vm1905_vm4 = vcmask 917248  }
 0x356   : > { %v1485_v18 = vsel %vm604_vm5, %v1478_v8, %v1480_v2  ;;  %1712 = vmatprep.subr.bf16.mxu1 %v1446_v17 }
 0x357   : > { %1713 = vmatpush1.bf16.msra.mxu1 %v1445_v13 }
 0x358   : > { %v1512_v19 = vpop.permute.xlu1 %1511  ;;  %1714 = vmatprep.subr.bf16.mxu1 %v1484_v11 }
 0x359   : > { %v1523_v20 = vsel %vm667_vm6, %v1512_v19, %v1514_v14  ;;  %v1518_v21 = vpop.permute.xlu0 %1517  ;;  %v1659_v40 = vld [vmem:[#allocation2 + $0x130] sm:$0xff] }
 0x35b   : > { %1715 = vmatpush1.bf16.msra.mxu1 %v1483_v7 }
 0x35c   : > { %v1482_v22 = vpop.permute.xlu1 %1481  ;;  %v1650_v24 = vld [vmem:[#allocation2 + $0xe8] sm:$0xff] }
 0x35d   : > { %v1486_v25 = vsel %vm604_vm5, %v1480_v2, %v1482_v22  ;;  %1498 = vst.msk [vmem:[#allocation2 + $0x118] sm:$0xff] %vm301_vm0, %v1482_v22  ;;  %2198 = vmatprep.subr.bf16.mxu0 %v1650_v24  ;;  %v1520_v26 = vpop.permute.xlu0 %1519  ;;  %vm1915_vm5 = vcmask 932864  }
 0x35e   : > { %v1525_v29 = vsel %vm667_vm6, %v1518_v21, %v1520_v26  ;;  %2199 = vmatpush3.bf16.msra.mxu0 %v1626_v28  ;;  %1716 = vmatprep.subr.bf16.mxu1 %v1486_v25 }
 0x35f   : > { %2200 = vmatprep.subr.bf16.mxu0 %v1653_v30  ;;  %1717 = vmatpush1.bf16.msra.mxu1 %v1485_v18 }
 0x360   : > { %v1554_v31 = vpop.permute.xlu1 %1553  ;;  %1718 = vmatprep.subr.bf16.mxu1 %v1524_v15 }
 0x361   : > { %v1556_v32 = vpop.permute.xlu0 %1555 }
 0x362   : > { %v1564_v34 = vsel %vm730_vm7, %v1554_v31, %v1556_v32  ;;  %1575 = vst.msk [vmem:[#allocation2 + $0x160] sm:$0xff] %vm301_vm0, %v1556_v32  ;;  %2201 = vmatpush3.bf16.msra.mxu0 %v1629_v33 }
 0x363   : > { %1719 = vmatpush1.bf16.msra.mxu1 %v1523_v20 }
 0x364   : > { %v1522_v35 = vpop.permute.xlu1 %1521  ;;  %v1656_v36 = vld [vmem:[#allocation2 + $0x118] sm:$0xff] }
 0x365   : > { %v1526_v37 = vsel %vm667_vm6, %v1520_v26, %v1522_v35  ;;  %1538 = vst.msk [vmem:[#allocation2 + $0x148] sm:$0xff] %vm301_vm0, %v1522_v35  ;;  %2202 = vmatprep.subr.bf16.mxu0 %v1656_v36  ;;  %v1560_v38 = vpop.permute.xlu0 %1559  ;;  %vm1918_vm6 = vcmask 1048448  }
 0x366   : > { %2203 = vmatpush3.bf16.msra.mxu0 %v1632_v39  ;;  %1720 = vmatprep.subr.bf16.mxu1 %v1526_v37 }
 0x367   : > { %2204 = vmatprep.subr.bf16.mxu0 %v1659_v40  ;;  %1721 = vmatpush1.bf16.msra.mxu1 %v1525_v29 }
 0x368   : > { %v1552_v41 = vpop.permute.xlu1 %1551  ;;  %1722 = vmatprep.subr.bf16.mxu1 %v1564_v34 }
 0x369   : > { %v1563_v42 = vsel %vm730_vm7, %v1552_v41, %v1554_v31  ;;  %v1558_v43 = vpop.permute.xlu0 %1557  ;;  %v1665_v50 = vld [vmem:[#allocation2 + $0x160] sm:$0xff] }
 0x36a   : > { %v1565_v44 = vsel %vm730_vm7, %v1558_v43, %v1560_v38  ;;  %2205 = vmatpush3.bf16.msra.mxu0 %v1635_v62 }
 0x36b   : > { %1723 = vmatpush1.bf16.msra.mxu1 %v1563_v42 }
 0x36c   : > { %v1562_v45 = vpop.permute.xlu1 %1561  ;;  %v1662_v46 = vld [vmem:[#allocation2 + $0x148] sm:$0xff] }
 0x36d   : > { %v1566_v47 = vsel %vm730_vm7, %v1560_v38, %v1562_v45  ;;  %1578 = vst.msk [vmem:[#allocation2 + $0x178] sm:$0xff] %vm301_vm0, %v1562_v45  ;;  %2206 = vmatprep.subr.bf16.mxu0 %v1662_v46  ;;  %v1596_v48 = vpop.permute.xlu0 %1595  ;;  %vm1964_vm7 = vcmask 818176  }
 0x36e   : > { %1615 = vst.msk [vmem:[#allocation2 + $0x190] sm:$0xff] %vm301_vm0, %v1596_v48  ;;  %2207 = vmatpush3.bf16.msra.mxu0 %v1638_v49  ;;  %1724 = vmatprep.subr.bf16.mxu1 %v1566_v47 }
 0x36f   : > { %2208 = vmatprep.subr.bf16.mxu0 %v1665_v50  ;;  %1725 = vmatpush1.bf16.msra.mxu1 %v1565_v44 }
 0x370   : > { %v1594_v52 = vpop.permute.xlu1 %1593 }
 0x371   : > { %v1604_v60 = vsel %vm793_vm8, %v1594_v52, %v1596_v48  ;;  %v1600_v53 = vpop.permute.xlu0 %1599 }
 0x372   : > { %2209 = vmatpush3.bf16.msra.mxu0 %v1641_v54  ;;  %1727 = vmatmul.mubr.bf16.vlgmr.msra.gmra.mrb[12].mxu1 %v2153_v51 }
 0x373   : > { %1735 = vmatprep.subr.bf16.mxu1 %v1604_v60  ;;  %1767 = vmatprep.mubr.bf16.mxu1 %v2572_v23 }
 0x374   : > { %v1592_v55 = vpop.permute.xlu1 %1591  ;;  %v1668_v56 = vld [vmem:[#allocation2 + $0x178] sm:$0xff] }
 0x375   : > { %v1603_v57 = vsel %vm793_vm8, %v1592_v55, %v1594_v52  ;;  %2210 = vmatprep.subr.bf16.mxu0 %v1668_v56  ;;  %v1598_v58 = vpop.permute.xlu0 %1597  ;;  %v1671_v23 = vld [vmem:[#allocation2 + $0x190] sm:$0xff] }
 0x376   : > { %v1605_v27 = vsel %vm793_vm8, %v1598_v58, %v1600_v53  ;;  %2211 = vmatpush3.bf16.msra.mxu0 %v1644_v59  ;;  %1736 = vmatpush1.bf16.msra.mxu1 %v1603_v57 }
 0x377   : > { %2229 = vmatprep.subr.bf16.mxu0 %v2574_v61 }
 0x378   : > { %v1602_v63 = vpop.permute.xlu1 %1601 }
 0x379   : > { %v1606_v11 = vsel %vm793_vm8, %v1600_v53, %v1602_v63  ;;  %1618 = vst.msk [vmem:[#allocation2 + $0x1a8] sm:$0xff] %vm301_vm0, %v1602_v63  ;;  %1809 = vmatmul.mubr.bf16.vlgmr.msra.gmra.mrb[8].mxu0 %v2153_v51 }
 0x37a   : > { %2230 = vmatpush3.bf16.msra.mxu0 %v1671_v23  ;;  %1737 = vmatprep.subr.bf16.mxu1 %v1606_v11 }
 0x37b   : > { %2231 = vmatprep.subr.bf16.mxu0 %v2574_v61  ;;  %1738 = vmatpush1.bf16.msra.mxu1 %v1605_v27 }
 0x37c   : > { %2233 = vmatprep.mubr.msk.bf16.mxu0 %vm2575_vm13, %v2574_v61 }
 0x37e   : > { %2156 = vmatmul.mubr.msk.bf16.vlgmr.msra.gmra.mrb[12].mxu1 %vm301_vm0, %v2381_v0 }
 0x380   : > { %v1674_v1 = vld [vmem:[#allocation2 + $0x1a8] sm:$0xff] }
 0x381   : > { %2232 = vmatpush3.bf16.msra.mxu0 %v1674_v1 }
 0x384   : > { %2234 = vmatmul.mubr.msk.bf16.vlgmr.msra.gmra.mrb[12].mxu0 %vm301_vm0, %v2381_v0 }
 0x389   : > { %v1679_v9 = vpop.permute.xlu1 %1678 }
 0x44c   : > { %v2212_v3 = vpop.f32.mrb[8].mxu0 }
 0x44d   : > { %v2213_v6 = vpop.f32.mrb[9].mxu0 }
 0x44e   : > { %v2214_v4 = vadd.f32 %v2213_v6, %v2212_v3  ;;  %v2215_v7 = vpop.f32.mrb[10].mxu0 }
 0x44f   : > { %v2216_v8 = vpop.f32.mrb[11].mxu0 }
 0x450   : > { %v1811_v2 = vadd.f32 %v2214_v4, %v1679_v9 }
 0x451   : > { %v1769_v10 = vpop.f32.mrb[12].mxu1 }
 0x452   : > { %v2245_v12 = vadd.f32 %v1769_v10, %v1679_v9  ;;  %v1771_v13 = vpop.f32.mrb[13].mxu1 }
 0x453   : > { %v2246_v14 = vadd.f32 %v1771_v13, %v1679_v9  ;;  %v1773_v5 = vpop.f32.mrb[14].mxu1 }
 0x454   : > { %v1856_v15 = vmax.f32 %v2245_v12, 0.0  ;;  %v1774_v16 = vpop.f32.mrb[15].mxu1 }
 0x455   : > { %v1857_v17 = vmax.f32 %v2246_v14, 0.0 }
 0x456   : > { %1867 = vrot.lane.b32.xlu1 %v1856_v15, %s2565_s24  ;;  %1864 = vst.msk [vmem:[%s3133_s10] sm:$0xff] %vm1863_vm14, %v1856_v15  ;;  %s2579_s24 = smov 100  }
 0x457   : > { %v1850_v18 = vpop.f32.mrb[12].mxu0 }
 0x458   : > { %v1851_v19 = vadd.f32 %v1850_v18, %v1811_v2  ;;  %v2235_v20 = vpop.f32.mrb[13].mxu0 }
 0x459   : > { %v1853_v21 = vpop.f32.mrb[14].mxu0 }
 0x45a   : > { %v1858_v22 = vmax.f32 %v1851_v19, 0.0  ;;  %v2236_v24 = vpop.f32.mrb[15].mxu0  ;;  %1874 = vrot.lane.b32.xlu1 %v1856_v15, %s2576_s28 }
 0x45c   : > { %1861 = vst.msk [vmem:[#allocation4 + $0x10] sm:$0xff] %vm301_vm0, %v1858_v22  ;;  %vm1877_vm0 = vcmask 392448  }
 0x45e   : > { %1881 = vrot.lane.b32.xlu1 %v1856_v15, %s2577_s7 }
 0x462   : > { %1888 = vrot.lane.b32.xlu1 %v1856_v15, %s2578_s15 }
 0x463   : > { %v1957_v25 = vld [vmem:[#allocation4 + $0x10] sm:$0xff] }
 0x464   : > { %1962 = vrot.lane.b32.xlu0 %v1957_v25, %s2579_s24 }
 0x466   : > { %1895 = vrot.lane.b32.xlu1 %v1856_v15, %s2580_s26  ;;  %s2588_s26 = smov [#allocation10]  }
 0x468   : > { %1911 = vrot.lane.b32.xlu0 %v1856_v15, %s2581_s12 }
 0x46a   : > { %1902 = vrot.lane.b32.xlu1 %v1856_v15, %s2582_s11 }
 0x46c   : > { %1922 = vrot.lane.b32.xlu0 %v1857_v17, %s2583_s14 }
 0x46e   : > { %1960 = vrot.lane.b32.xlu1 %v1857_v17, %s2579_s24 }
 0x470   : > { %1928 = vrot.lane.b32.xlu0 %v1857_v17, %s2566_s17  ;;  %s2163_s17 = sshll.u32 %s2640_s22, 8  ;;  %s1975_s22 = scalar_lea.sflag [#allocation7], %s2764_s27 }
 0x471   : > { %s3173_s15 = scalar_lea.hbm %s3224_s5, %s2163_s17 }
 0x472   : > { %1913 = vrot.lane.b32.xlu1 %v1857_v17, %s2581_s12  ;;  %s2492_s12 = sshll.u32 %s2588_s26, 4  ;;  %s2493_s12 = int_to_ptr.vmem [resolvable:$false] %s2492_s12 }
 0x473   : > { %s2494_s11 = scalar_lea.vmem %s2493_s12, 512 }
 0x474   : > { %1934 = vrot.lane.b32.xlu0 %v1857_v17, %s2568_s6  ;;  %s1989_s6 = sshll.u32 %s3133_s10, 4  ;;  %s3175_s6 = int_to_ptr.vmem [resolvable:$true] %s1989_s6 }
 0x475   : > { %s2488_s24 = scalar_lea.vmem %s3175_s6, 256  ;;  %p2495_p10 = scmp.lt.s32.totalorder %s3175_s6, %s2493_s12 }
 0x476   : > { %p2489_p4 = scmp.ne.s32.totalorder %s3175_s6, %s2488_s24  ;;  %p2496_p11 = scmp.lt.s32.totalorder %s2494_s11, %s2488_s24 }
 0x478   : > { %1940 = vrot.lane.b32.xlu0 %v1857_v17, %s2584_s13  ;;  %p2490_p6 = pnand %p2489_p4, %p2713_p12  ;;  %p2497_p3 = por %p2496_p11, %p2495_p10 }
 0x47a   : > { %p2491_p8 = pneg %p2490_p6 }
 0x47c   : > { %1946 = vrot.lane.b32.xlu0 %v1857_v17, %s2585_s29  ;;  %p2498_p7 = pnand %p2497_p3, %p2491_p8 }
 0x480   : > { %1952 = vrot.lane.b32.xlu0 %v1857_v17, %s2586_s16 }
 0x484   : > { %1970 = vrot.lane.b32.xlu0 %v1957_v25, %s2587_s23 }
 0x4c8   : > { %v1868_v26 = vpop.permute.xlu1 %1867 }
 0x4c9   : > { %1871 = vst.msk [vmem:[%s3133_s10] sm:$0xff] %vm1870_vm15, %v1868_v26 }
 0x4cc   : > { %v1875_v28 = vpop.permute.xlu1 %1874 }
 0x4cd   : > { %1878 = vst.msk [vmem:[%s3133_s10] sm:$0xff] %vm1877_vm0, %v1875_v28 }
 0x4d0   : > { %v1882_v29 = vpop.permute.xlu1 %1881 }
 0x4d1   : > { %1885 = vst.msk [vmem:[%s3133_s10] sm:$0xff] %vm1884_vm1, %v1882_v29 }
 0x4d4   : > { %v1889_v30 = vpop.permute.xlu1 %1888 }
 0x4d5   : > { %1892 = vst.msk [vmem:[%s3133_s10] sm:$0xff] %vm1891_vm2, %v1889_v30 }
 0x4d6   : > { %v1963_v31 = vpop.permute.xlu0 %1962 }
 0x4d8   : > { %v1896_v32 = vpop.permute.xlu1 %1895 }
 0x4d9   : > { %1899 = vst.msk [vmem:[%s3133_s10] sm:$0xff] %vm1898_vm3, %v1896_v32 }
 0x4da   : > { %v1912_v33 = vpop.permute.xlu0 %1911 }
 0x4dc   : > { %v1903_v34 = vpop.permute.xlu1 %1902 }
 0x4dd   : > { %1906 = vst.msk [vmem:[%s3133_s10] sm:$0xff] %vm1905_vm4, %v1903_v34 }
 0x4de   : > { %v1923_v35 = vpop.permute.xlu0 %1922 }
 0x4df   : > { %1925 = vst.msk [vmem:[%s3133_s10 + $0x8] sm:$0xff] %vm1863_vm14, %v1923_v35 }
 0x4e0   : > { %v1961_v36 = vpop.permute.xlu1 %1960 }
 0x4e1   : > { %v1965_v62 = vsel %vm1964_vm7, %v1961_v36, %v1963_v31 }
 0x4e2   : > { %v1929_v37 = vpop.permute.xlu0 %1928 }
 0x4e3   : > { %1931 = vst.msk [vmem:[%s3133_s10 + $0x8] sm:$0xff] %vm1870_vm15, %v1929_v37 }
 0x4e4   : > { %v1914_v38 = vpop.permute.xlu1 %1913 }
 0x4e5   : > { %v1916_v39 = vsel %vm1915_vm5, %v1912_v33, %v1914_v38 }
 0x4e6   : > { %v1935_v40 = vpop.permute.xlu0 %1934  ;;  %1919 = vst.msk [vmem:[%s3133_s10] sm:$0xff] %vm1918_vm6, %v1916_v39 }
 0x4e7   : > { %1937 = vst.msk [vmem:[%s3133_s10 + $0x8] sm:$0xff] %vm1877_vm0, %v1935_v40 }
 0x4ea   : > { %v1941_v41 = vpop.permute.xlu0 %1940 }
 0x4eb   : > { %1943 = vst.msk [vmem:[%s3133_s10 + $0x8] sm:$0xff] %vm1884_vm1, %v1941_v41 }
 0x4ee   : > { %v1947_v42 = vpop.permute.xlu0 %1946 }
 0x4ef   : > { %1949 = vst.msk [vmem:[%s3133_s10 + $0x8] sm:$0xff] %vm1891_vm2, %v1947_v42 }
 0x4f2   : > { %v1953_v43 = vpop.permute.xlu0 %1952 }
 0x4f3   : > { %1955 = vst.msk [vmem:[%s3133_s10 + $0x8] sm:$0xff] %vm1898_vm3, %v1953_v43 }
 0x4f4   : > { %1967 = vst.msk [vmem:[%s3133_s10 + $0x8] sm:$0xff] %vm1905_vm4, %v1965_v62 }
 0x4f6   : > { %v1971_v44 = vpop.permute.xlu0 %1970 }
 0x4f7   : > { %1973 = vst.msk [vmem:[%s3133_s10 + $0x8] sm:$0xff] %vm1918_vm6, %v1971_v44 }
 0x4f8   : > { %2501 = shalt.err (!%p2498_p7)
}
 0x4f9   : > { %s2502_s27 = scalar_lea.hbm %s3173_s15, 256  ;;  %s2506_s13 = scalar_lea.hbm %s3224_s5, 512 }
 0x4fa   : > { %p2503_p9 = scmp.ne.s32.totalorder %s3173_s15, %s2502_s27  ;;  %p2507_p5 = scmp.lt.u32.totalorder %s3173_s15, %s3224_s5 }
 0x4fb   : > { %p2508_p13 = scmp.lt.u32.totalorder %s2506_s13, %s2502_s27  ;;  %p2510_p4 = scmp.lt.u32.totalorder %s2502_s27, %s3173_s15 }
 0x4fc   : > { %p2504_p1 = pnand %p2503_p9, %p2713_p12 }
 0x4fd   : > { %p2509_p2 = por %p2508_p13, %p2507_p5 }
 0x4fe   : > { %p2505_p0 = pneg %p2504_p1 }
 0x4ff   : > { %p2511_p6 = por %p2510_p4, %p2509_p2 }
 0x501   : > { %p2512_p8 = pnand %p2511_p6, %p2505_p0 }
 0x503   : > { %2515 = shalt.err (!%p2512_p8)
}
 0x504   : > { %2268 = dma.vmem_to_hbm [thread:$0]  (%p2713_p12), %s3175_s6, 256, %s3173_s15, %s1975_s22  }
 0x505 PF: > { %s2001_s23 = sand.u32 1, %s2546_s18   ;;  %p3244_p10 = scmp.ne.s32.totalorder %s3232_s25, 0 }
 0x506   : > { %p3245_p11 = scmp.ge.s32.totalorder %s2558_s21, 2  ;;  %s2002_s17 = scalar_lea.sflag [#allocation7], %s2001_s23 }
 0x508   : > { %p2279_p3 = pnand %p3245_p11, %p3244_p10 }
 0x50a   : > { %2541 = dma.done.wait (!%p2279_p3), %s2002_s17, 256  }
 0x50b   : > { %2543 = vsyncadd (!%p2279_p3), %s2002_s17, 4294967040  ;;  %p19_p7 = scmp.ge.s32.totalorder %s2675_s30, 4   ;;  %s3246_s18 = smov %s2550_s19 }
 0x50c   : > { %s3247_s19 = smov %s2554_s20  ;;  %s3248_s20 = smov %s2709_s8 }
 0x50d   : > { %s3249_s21 = smov %s2675_s30  ;;  %21 = sbr.rel (!%p19_p7) target bundleno = 6 (0x6), region = 89 }
 0x514   :  { %2007 = vsyncpa [#allocation6], 1 }
 0x515   :  { %2009 = vsyncpa [#allocation6 + $0x1], 1 }
 0x516   :  { %2010 = vsyncpa [#allocation9], 1 }
 0x517   :  { %2011 = vsyncpa [#allocation7], 1 }
 0x518   :  { %2013 = vsyncpa [#allocation7 + $0x1], 1 }

</bundles_post_ra>
